<compile_context>
chip_gen: v7x
topology: tpu7x:2x2x1
jax: 0.10.0
libtpu: 0.0.40
codegen_flags: <defaults>
</compile_context>

<pallas_src>
import functools

import jax
import jax.numpy as jnp
from jax.experimental import pallas as pl
from jax.experimental.pallas import tpu as pltpu

LANE = 128          # channel padding granularity (lane width)
TM = 512            # rows per M tile for 1x1 units (v7x-safe; 1024 OK on v5e/v6e)
ROW_ACC_BYTES = 128 * 1024   # target f32 accumulator footprint for the 3x3 row tile
VMEM_LIMIT = 48 * 1024 * 1024


def _pad_to(n, m):
    return -(-n // m) * m


def _pad_axis(a, axis, target):
    if a.shape[axis] == target:
        return a
    pad = [(0, 0)] * a.ndim
    pad[axis] = (0, target - a.shape[axis])
    return jnp.pad(a, pad)


# ----------------------------- Pallas kernels ------------------------------

def _matmul_bias_act_kernel(x_ref, w_ref, b_ref, o_ref, *, relu):
    acc = jnp.dot(x_ref[...], w_ref[...], preferred_element_type=jnp.float32)
    acc = acc + b_ref[...]
    if relu:
        acc = jnp.maximum(acc, 0.0)
    o_ref[...] = acc.astype(o_ref.dtype)


def _matmul_bias_res_act_kernel(x_ref, w_ref, b_ref, r_ref, o_ref, *, relu):
    acc = jnp.dot(x_ref[...], w_ref[...], preferred_element_type=jnp.float32)
    acc = acc + b_ref[...] + r_ref[...].astype(jnp.float32)
    if relu:
        acc = jnp.maximum(acc, 0.0)
    o_ref[...] = acc.astype(o_ref.dtype)


def _strided_1x1_kernel(x_ref, w_ref, b_ref, o_ref):
    # x_ref: (TR, Wo, s*C) row tile of the space-to-depth view; the lanes that
    # belong to column-phase != 0 hit zero weight rows, so no explicit select.
    tr, wo, k = x_ref.shape
    cout = o_ref.shape[-1]
    acc = jnp.dot(x_ref[...].reshape(tr * wo, k), w_ref[...],
                  preferred_element_type=jnp.float32)
    acc = acc + b_ref[...]
    o_ref[...] = acc.reshape(tr, wo, cout).astype(o_ref.dtype)


def _conv3x3_kernel(x_ref, w_ref, b_ref, o_ref, *, stride, tr, wo, relu):
    # x_ref: (s*s, Hs, Ws, C) phase image, VMEM-resident across row tiles.
    # w_ref: (9, C, Cout) scale-folded weights; b_ref: (1, Cout).
    # o_ref: (tr*wo, Cout) -- output already flattened over (rows, cols).
    c = x_ref.shape[-1]
    cout = o_ref.shape[-1]
    row0 = pl.program_id(1) * tr
    acc = jnp.zeros((tr * wo, cout), jnp.float32)
    for t in range(9):                                   # unrolled 9-tap accumulation
        dy, dx = t // 3, t % 3
        p = (dy % stride) * stride + (dx % stride)       # static phase index
        win = x_ref[p, pl.ds(row0 + dy // stride, tr), pl.ds(dx // stride, wo), :]
        acc = acc + jnp.dot(win.reshape(tr * wo, c), w_ref[t],
                            preferred_element_type=jnp.float32)
    acc = acc + b_ref[...]
    if relu:
        acc = jnp.maximum(acc, 0.0)
    o_ref[...] = acc.astype(o_ref.dtype)


# ----------------------------- fused conv wrappers --------------------------

_VMEM_FULL = pl.BlockSpec(memory_space=pltpu.MemorySpace.VMEM)  # resident, not pipelined


def fused_matmul_bias_act(x2d, w2d, bias, residual, relu, out_dtype):
    """(M,K)@(K,N) + bias [+ residual] [ReLU], tiled over M (ragged tiles OK)."""
    M, K = x2d.shape
    _, Nout = w2d.shape
    tm = min(TM, _pad_to(M, 8))
    grid = (pl.cdiv(M, tm),)

    in_specs = [
        pl.BlockSpec((tm, K), lambda i: (i, 0)),
        _VMEM_FULL,          # weights: one resident copy, no double-buffering
        _VMEM_FULL,          # bias
    ]
    args = [x2d, w2d, bias]
    if residual is not None:
        in_specs.append(pl.BlockSpec((tm, Nout), lambda i: (i, 0)))
        args.append(residual)
        kernel = functools.partial(_matmul_bias_res_act_kernel, relu=relu)
    else:
        kernel = functools.partial(_matmul_bias_act_kernel, relu=relu)

    return pl.pallas_call(
        kernel,
        out_shape=jax.ShapeDtypeStruct((M, Nout), out_dtype),
        grid=grid,
        in_specs=in_specs,
        out_specs=pl.BlockSpec((tm, Nout), lambda i: (i, 0)),
        compiler_params=pltpu.CompilerParams(
            dimension_semantics=("parallel",),
            vmem_limit_bytes=VMEM_LIMIT),
    )(*args)


def conv1x1_unit(x_nhwc, w2d, bias, relu, residual=None, out_dtype=jnp.bfloat16):
    """x_nhwc bf16 (N,H,W,K); w2d bf16 (K,Cout) scale-folded; bias f32 (1,Cout)."""
    N, H, W, K = x_nhwc.shape
    Cout = w2d.shape[1]
    M = N * H * W
    x2d = x_nhwc.reshape(M, K)
    r2d = residual.reshape(M, Cout) if residual is not None else None
    y = fused_matmul_bias_act(x2d, w2d, bias, r2d, relu, out_dtype)
    return y.reshape(N, H, W, Cout)


def conv1x1_strided_unit(x_nhwc, w2d, bias, stride, out_dtype=jnp.bfloat16):
    """1x1 conv with spatial stride folded into the kernel (no wrapper gather).

    Requires H % stride == 0 and W % stride == 0. The input is viewed (free
    reshape) as (N*Ho, s, Wo, s*C); the row phase is selected by a size-1
    block, the column phase by zero-extended weight rows.
    """
    N, H, W, C = x_nhwc.shape
    s = stride
    Ho, Wo = H // s, W // s
    Cout = w2d.shape[1]
    xv = x_nhwc.reshape(N * Ho, s, Wo, s * C)            # free, row-major view
    M = N * Ho
    tr = max(1, min(M, TM // max(Wo, 1)))

    out = pl.pallas_call(
        _strided_1x1_kernel,
        out_shape=jax.ShapeDtypeStruct((M, Wo, Cout), out_dtype),
        grid=(pl.cdiv(M, tr),),
        in_specs=[
            pl.BlockSpec((tr, None, Wo, s * C), lambda i: (i, 0, 0, 0)),
            _VMEM_FULL,      # (s*C, Cout) weights, rows >= C are zeros
            _VMEM_FULL,      # bias
        ],
        out_specs=pl.BlockSpec((tr, Wo, Cout), lambda i: (i, 0, 0)),
        compiler_params=pltpu.CompilerParams(
            dimension_semantics=("parallel",),
            vmem_limit_bytes=VMEM_LIMIT),
    )(xv, w2d, bias)
    return out.reshape(N, Ho, Wo, Cout)


def conv3x3_unit(x_nhwc, w9, bias, stride, relu, out_dtype=jnp.bfloat16):
    """3x3, pad=1, stride s. x bf16 (N,H,W,C); w9 bf16 (9,C,Cout); bias f32 (1,Cout)."""
    N, H, W, C = x_nhwc.shape
    Cout = w9.shape[-1]
    s = stride
    Ho = (H - 1) // s + 1
    Wo = (W - 1) // s + 1

    # Output-row tile: keep the f32 accumulator around ROW_ACC_BYTES.
    target_rows = max(8, ROW_ACC_BYTES // (4 * max(Cout, 1)))
    tr = max(1, min(Ho, target_rows // max(Wo, 1)))
    if (tr * Wo) % 8 and tr < Ho:
        tr = Ho                                         # keep out block 8-aligned or full
    R = pl.cdiv(Ho, tr)

    maxoff = 2 // s
    Hs = max(-(-(H + 2) // s), R * tr + maxoff)         # enough rows for ragged tiles
    Ws = -(-(W + 2) // s)

    # Halo pad (1 top/left) plus bottom/right pad up to the phase grid.
    xp = jnp.pad(x_nhwc, ((0, 0), (1, Hs * s - H - 1), (1, Ws * s - W - 1), (0, 0)))
    # Space-to-depth phases: (N, s*s, Hs, Ws, C). For s==1 this is a free reshape.
    # TODO(synk): fold the halo pad / phase selection into the kernel to avoid
    #             this extra HBM pass for stride > 1.
    xph = xp.reshape(N, Hs, s, Ws, s, C).transpose(0, 2, 4, 1, 3, 5)
    xph = xph.reshape(N, s * s, Hs, Ws, C)

    kernel = functools.partial(_conv3x3_kernel, stride=s, tr=tr, wo=Wo, relu=relu)
    out = pl.pallas_call(
        kernel,
        out_shape=jax.ShapeDtypeStruct((N, Ho * Wo, Cout), out_dtype),
        grid=(N, R),
        in_specs=[
            # Block index constant along the row axis -> stays VMEM-resident.
            pl.BlockSpec((None, s * s, Hs, Ws, C), lambda n, r: (n, 0, 0, 0, 0)),
            _VMEM_FULL,      # (9, C, Cout) weights
            _VMEM_FULL,      # bias
        ],
        out_specs=pl.BlockSpec((None, tr * Wo, Cout), lambda n, r: (n, r, 0)),
        compiler_params=pltpu.CompilerParams(
            dimension_semantics=("parallel", "arbitrary"),
            vmem_limit_bytes=VMEM_LIMIT),
    )(xph, w9, bias)
    return out.reshape(N, Ho, Wo, Cout)


# ------------------------------ parameters ---------------------------------

def bn_fold(gamma, beta, mean, var, eps=1e-5):
    scale = gamma / jnp.sqrt(var + eps)
    bias = beta - mean * scale
    return scale, bias


def init_conv_unit(key, cin, cout, k):
    kw, kg, kb, km, kv = jax.random.split(key, 5)
    w = jax.random.normal(kw, (cout, cin, k, k), jnp.float32) * 0.1
    gamma = jax.random.uniform(kg, (cout,), jnp.float32, 0.5, 1.5)
    beta = jax.random.normal(kb, (cout,), jnp.float32) * 0.1
    mean = jax.random.normal(km, (cout,), jnp.float32) * 0.1
    var = jax.random.uniform(kv, (cout,), jnp.float32, 0.5, 1.5)
    scale, bias = bn_fold(gamma, beta, mean, var)
    return dict(w=w, scale=scale, bias=bias)


def init_bottleneck(key, cin, width, stride):
    cout = 4 * width
    keys = jax.random.split(key, 4)
    params = {
        "u1": init_conv_unit(keys[0], cin, width, 1),
        "u2": init_conv_unit(keys[1], width, width, 3),
        "u3": init_conv_unit(keys[2], width, cout, 1),
    }
    if stride > 1 or cin != cout:
        params["down"] = init_conv_unit(keys[3], cin, cout, 1)
    return params


def prep_unit(p, cin_p, cout_p):
    """Fold BN scale into the weights (in f32), pad channels, cast to bf16."""
    w = p["w"]                                   # (cout, cin, k, k), PyTorch layout
    cout, cin, k, _ = w.shape
    wf = w * p["scale"][:, None, None, None]     # conv(x,w)*s == conv(x, w*s)
    bias = _pad_axis(p["bias"], 0, cout_p).reshape(1, cout_p).astype(jnp.float32)
    if k == 1:
        w2d = wf.reshape(cout, cin).T            # (cin, cout)
        w2d = _pad_axis(_pad_axis(w2d, 0, cin_p), 1, cout_p).astype(jnp.bfloat16)
        return w2d, bias
    w9 = jnp.transpose(wf, (2, 3, 1, 0)).reshape(k * k, cin, cout)   # (ky,kx) major
    w9 = _pad_axis(_pad_axis(w9, 1, cin_p), 2, cout_p).astype(jnp.bfloat16)
    return w9, bias


def prepare_params(params, cin, stride):
    """One-time weight/bias preparation (hoisted out of the forward pass)."""
    width = params["u1"]["w"].shape[0]
    cout = 4 * width
    cin_p = _pad_to(cin, LANE)
    w_p = _pad_to(width, LANE)
    cout_p = _pad_to(cout, LANE)
    prepped = {
        "u1": prep_unit(params["u1"], cin_p, w_p),
        "u2": prep_unit(params["u2"], w_p, w_p),
        "u3": prep_unit(params["u3"], w_p, cout_p),
    }
    if "down" in params:
        wd, bd = prep_unit(params["down"], cin_p, cout_p)
        if stride > 1:
            # Zero-extend K so the strided kernel can consume the space-to-depth
            # view (..., Wo, stride*cin_p) directly (column-phase != 0 lanes
            # multiply against zeros).
            wd = jnp.concatenate(
                [wd, jnp.zeros(((stride - 1) * cin_p, cout_p), wd.dtype)], axis=0)
        prepped["down"] = (wd, bd)
    return prepped


# ------------------------------ forward pass --------------------------------

def bottleneck_forward(x_nchw, prepped, stride, cout):
    # NCHW<->NHWC conversion, channel padding and bf16 cast happen once at the
    # block boundary; in a full ResNet keep activations NHWC/bf16 end-to-end.
    N, cin, H, W = x_nchw.shape
    w1, b1 = prepped["u1"]
    w2, b2 = prepped["u2"]
    w3, b3 = prepped["u3"]
    cin_p = w1.shape[0]

    x = jnp.transpose(x_nchw, (0, 2, 3, 1))
    x = _pad_axis(x, 3, cin_p).astype(jnp.bfloat16)

    if "down" in prepped:
        wd, bd = prepped["down"]
        if stride > 1:
            if H % stride == 0 and W % stride == 0:
                y = conv1x1_strided_unit(x, wd, bd, stride)
            else:
                # TODO(synk): odd spatial dims fall back to a wrapper gather.
                xs = x[:, ::stride, ::stride, :]
                y = conv1x1_unit(xs, wd[:cin_p], bd, relu=False)
        else:
            y = conv1x1_unit(x, wd, bd, relu=False)
    else:
        y = x                                    # cin==cout, stride==1 -> cin_p==cout_p

    h = conv1x1_unit(x, w1, b1, relu=True)
    h = conv3x3_unit(h, w2, b2, stride=stride, relu=True)
    h = conv1x1_unit(h, w3, b3, relu=True, residual=y, out_dtype=jnp.float32)

    # TODO(synk): keep NHWC/bf16 output when the consumer allows (saves an
    #             f32-wide HBM pass for the slice + transpose below).
    h = h[..., :cout]                            # drop lane-padding channels
    return jnp.transpose(h, (0, 3, 1, 2))        # NHWC -> NCHW


# ------------------------------ reference (plain JAX, f32) -------------------

def _ref_unit(x, p, stride, pad, relu, add=None):
    y = jax.lax.conv_general_dilated(
        x, p["w"], (stride, stride), [(pad, pad), (pad, pad)],
        dimension_numbers=("NCHW", "OIHW", "NCHW"))
    y = y * p["scale"][None, :, None, None] + p["bias"][None, :, None, None]
    if add is not None:
        y = y + add
    if relu:
        y = jnp.maximum(y, 0.0)
    return y


def bottleneck_ref(x, params, stride):
    y = _ref_unit(x, params["down"], stride, 0, False) if "down" in params else x
    h = _ref_unit(x, params["u1"], 1, 0, True)
    h = _ref_unit(h, params["u2"], stride, 1, True)
    h = _ref_unit(h, params["u3"], 1, 0, True, add=y)
    return h


# ----------------------------------- main ------------------------------------

if __name__ == "__main__":
    key = jax.random.PRNGKey(0)
    kx, kp = jax.random.split(key)

    N, cin, H, W = 2, 16, 16, 16
    width, stride = 8, 2              # cout = 32, downsample present
    cout = 4 * width

    x = jax.random.normal(kx, (N, cin, H, W), jnp.float32)
    params = init_bottleneck(kp, cin, width, stride)
    prepped = prepare_params(params, cin, stride)   # one-time weight prep (hoisted)

    fwd = jax.jit(bottleneck_forward, static_argnums=(2, 3))
    out = jax.block_until_ready(fwd(x, prepped, stride, cout))

    ref = jax.block_until_ready(bottleneck_ref(x, params, stride))
    assert out.shape == (N, cout, H // stride, W // stride), out.shape
    err = float(jnp.abs(out - ref).max())
    assert jnp.allclose(out, ref, rtol=2e-2, atol=2e-2), err

    print("KERNEL_OK")
</pallas_src>

<mosaic_0001>
module attributes {stable_mosaic.version = 11 : i64} {
  func.func @_matmul_bias_act_kernel(%arg0: i32, %arg1: memref<512x128xbf16, #tpu.memory_space<vmem>>, %arg2: memref<128x128xbf16, #tpu.memory_space<vmem>>, %arg3: memref<1x128xf32, #tpu.memory_space<vmem>>, %arg4: memref<512x128xbf16, #tpu.memory_space<vmem>>) attributes {dimension_semantics = [#tpu.dimension_semantics<parallel>], iteration_bounds = array<i64: 1>, scalar_prefetch = 0 : i64, scratch_operands = 0 : i64, tpu.core_type = #tpu.core_type<tc>, window_params = [{transform_indices = @transform_0, window_bounds = array<i64: 512, 128>}, {pipeline_mode = #tpu.pipeline_mode<synchronous>, transform_indices = @transform_1, window_bounds = array<i64: 128, 128>}, {pipeline_mode = #tpu.pipeline_mode<synchronous>, transform_indices = @transform_2, window_bounds = array<i64: 1, 128>}, {transform_indices = @transform_3, window_bounds = array<i64: 512, 128>}]} {
    %c0 = arith.constant 0 : index
    %c0_0 = arith.constant 0 : index
    %0 = vector.load %arg1[%c0, %c0_0] : memref<512x128xbf16, #tpu.memory_space<vmem>>, vector<512x128xbf16>
    %c0_1 = arith.constant 0 : index
    %c0_2 = arith.constant 0 : index
    %1 = vector.load %arg2[%c0_1, %c0_2] : memref<128x128xbf16, #tpu.memory_space<vmem>>, vector<128x128xbf16>
    %cst = arith.constant dense<0.000000e+00> : vector<512x128xf32>
    %2 = tpu.matmul %0, %1, %cst {dimension_numbers = #tpu.dot_dimension_numbers<[1], [0], [0], [1], [0, 0, 1, 1], [], []>} : vector<512x128xbf16>, vector<128x128xbf16>, vector<512x128xf32> -> vector<512x128xf32>
    %c0_3 = arith.constant 0 : index
    %c0_4 = arith.constant 0 : index
    %3 = vector.load %arg3[%c0_3, %c0_4] : memref<1x128xf32, #tpu.memory_space<vmem>>, vector<1x128xf32>
    %4 = vector.broadcast %3 : vector<1x128xf32> to vector<512x128xf32>
    %5 = arith.addf %2, %4 : vector<512x128xf32>
    %cst_5 = arith.constant 0.000000e+00 : f32
    %6 = vector.broadcast %cst_5 : f32 to vector<512x128xf32>
    %7 = arith.maximumf %5, %6 : vector<512x128xf32>
    %8 = arith.truncf %7 : vector<512x128xf32> to vector<512x128xbf16>
    %c0_6 = arith.constant 0 : index
    %c0_7 = arith.constant 0 : index
    %9 = vector.load %arg4[%c0_6, %c0_7] : memref<512x128xbf16, #tpu.memory_space<vmem>>, vector<512x128xbf16>
    tpu.vector_store %arg4[%c0_6, %c0_7], %8 {strides = array<i32>} : memref<512x128xbf16, #tpu.memory_space<vmem>>, vector<512x128xbf16>,
    return
  }
  func.func @transform_0(%arg0: i32) -> (i32, i32) {
    %c0_i32 = arith.constant 0 : i32
    %c0_i32_0 = arith.constant 0 : i32
    return %arg0, %c0_i32 : i32, i32
  }
  func.func @transform_1(%arg0: i32) -> (i32, i32) {
    %c0_i32 = arith.constant 0 : i32
    %c0_i32_0 = arith.constant 0 : i32
    %c0_i32_1 = arith.constant 0 : i32
    return %c0_i32, %c0_i32_0 : i32, i32
  }
  func.func @transform_2(%arg0: i32) -> (i32, i32) {
    %c0_i32 = arith.constant 0 : i32
    %c0_i32_0 = arith.constant 0 : i32
    %c0_i32_1 = arith.constant 0 : i32
    return %c0_i32, %c0_i32_0 : i32, i32
  }
  func.func @transform_3(%arg0: i32) -> (i32, i32) {
    %c0_i32 = arith.constant 0 : i32
    %c0_i32_0 = arith.constant 0 : i32
    return %arg0, %c0_i32 : i32, i32
  }
}

module attributes {stable_mosaic.version = 11 : i64} {
  func.func @_conv3x3_kernel(%arg0: i32, %arg1: i32, %arg2: memref<1x4x9x9x128xbf16, #tpu.memory_space<vmem>>, %arg3: memref<9x128x128xbf16, #tpu.memory_space<vmem>>, %arg4: memref<1x128xf32, #tpu.memory_space<vmem>>, %arg5: memref<1x64x128xbf16, #tpu.memory_space<vmem>>) attributes {dimension_semantics = [#tpu.dimension_semantics<parallel>, #tpu.dimension_semantics<arbitrary>], iteration_bounds = array<i64: 2, 1>, scalar_prefetch = 0 : i64, scratch_operands = 0 : i64, tpu.core_type = #tpu.core_type<tc>, window_params = [{transform_indices = @transform_0, window_bounds = array<i64: 1, 4, 9, 9, 128>}, {pipeline_mode = #tpu.pipeline_mode<synchronous>, transform_indices = @transform_1, window_bounds = array<i64: 9, 128, 128>}, {pipeline_mode = #tpu.pipeline_mode<synchronous>, transform_indices = @transform_2, window_bounds = array<i64: 1, 128>}, {transform_indices = @transform_3, window_bounds = array<i64: 1, 64, 128>}]} {
    %c8_i32 = arith.constant 8 : i32
    %0 = arith.muli %arg1, %c8_i32 : i32
    %cst = arith.constant 0.000000e+00 : f32
    %1 = vector.broadcast %cst : f32 to vector<64x128xf32>
    %c0_i32 = arith.constant 0 : i32
    %2 = arith.addi %0, %c0_i32 : i32
    %c0 = arith.constant 0 : index
    %c0_0 = arith.constant 0 : index
    %3 = arith.index_cast %2 : i32 to index
    %c0_1 = arith.constant 0 : index
    %c0_2 = arith.constant 0 : index
    %4 = vector.load %arg2[%c0, %c0_0, %3, %c0_1, %c0_2] : memref<1x4x9x9x128xbf16, #tpu.memory_space<vmem>>, vector<1x1x8x8x128xbf16>
    %5 = vector.shape_cast %4 : vector<1x1x8x8x128xbf16> to vector<8x8x128xbf16>
    %6 = vector.shape_cast %5 : vector<8x8x128xbf16> to vector<64x128xbf16>
    %c0_3 = arith.constant 0 : index
    %c0_4 = arith.constant 0 : index
    %c0_5 = arith.constant 0 : index
    %7 = vector.load %arg3[%c0_3, %c0_4, %c0_5] : memref<9x128x128xbf16, #tpu.memory_space<vmem>>, vector<1x128x128xbf16>
    %8 = vector.shape_cast %7 : vector<1x128x128xbf16> to vector<128x128xbf16>
    %cst_6 = arith.constant dense<0.000000e+00> : vector<64x128xf32>
    %9 = tpu.matmul %6, %8, %cst_6 {dimension_numbers = #tpu.dot_dimension_numbers<[1], [0], [0], [1], [0, 0, 1, 1], [], []>} : vector<64x128xbf16>, vector<128x128xbf16>, vector<64x128xf32> -> vector<64x128xf32>
    %10 = arith.addf %1, %9 : vector<64x128xf32>
    %c0_i32_7 = arith.constant 0 : i32
    %11 = arith.addi %0, %c0_i32_7 : i32
    %c0_8 = arith.constant 0 : index
    %c1 = arith.constant 1 : index
    %12 = arith.index_cast %11 : i32 to index
    %c0_9 = arith.constant 0 : index
    %c0_10 = arith.constant 0 : index
    %13 = vector.load %arg2[%c0_8, %c1, %12, %c0_9, %c0_10] : memref<1x4x9x9x128xbf16, #tpu.memory_space<vmem>>, vector<1x1x8x8x128xbf16>
    %14 = vector.shape_cast %13 : vector<1x1x8x8x128xbf16> to vector<8x8x128xbf16>
    %15 = vector.shape_cast %14 : vector<8x8x128xbf16> to vector<64x128xbf16>
    %c1_11 = arith.constant 1 : index
    %c0_12 = arith.constant 0 : index
    %c0_13 = arith.constant 0 : index
    %16 = vector.load %arg3[%c1_11, %c0_12, %c0_13] : memref<9x128x128xbf16, #tpu.memory_space<vmem>>, vector<1x128x128xbf16>
    %17 = vector.shape_cast %16 : vector<1x128x128xbf16> to vector<128x128xbf16>
    %cst_14 = arith.constant dense<0.000000e+00> : vector<64x128xf32>
    %18 = tpu.matmul %15, %17, %cst_14 {dimension_numbers = #tpu.dot_dimension_numbers<[1], [0], [0], [1], [0, 0, 1, 1], [], []>} : vector<64x128xbf16>, vector<128x128xbf16>, vector<64x128xf32> -> vector<64x128xf32>
    %19 = arith.addf %10, %18 : vector<64x128xf32>
    %c0_i32_15 = arith.constant 0 : i32
    %20 = arith.addi %0, %c0_i32_15 : i32
    %c0_16 = arith.constant 0 : index
    %c0_17 = arith.constant 0 : index
    %21 = arith.index_cast %20 : i32 to index
    %c1_18 = arith.constant 1 : index
    %c0_19 = arith.constant 0 : index
    %22 = vector.load %arg2[%c0_16, %c0_17, %21, %c1_18, %c0_19] : memref<1x4x9x9x128xbf16, #tpu.memory_space<vmem>>, vector<1x1x8x8x128xbf16>
    %23 = vector.shape_cast %22 : vector<1x1x8x8x128xbf16> to vector<8x8x128xbf16>
    %24 = vector.shape_cast %23 : vector<8x8x128xbf16> to vector<64x128xbf16>
    %c2 = arith.constant 2 : index
    %c0_20 = arith.constant 0 : index
    %c0_21 = arith.constant 0 : index
    %25 = vector.load %arg3[%c2, %c0_20, %c0_21] : memref<9x128x128xbf16, #tpu.memory_space<vmem>>, vector<1x128x128xbf16>
    %26 = vector.shape_cast %25 : vector<1x128x128xbf16> to vector<128x128xbf16>
    %cst_22 = arith.constant dense<0.000000e+00> : vector<64x128xf32>
    %27 = tpu.matmul %24, %26, %cst_22 {dimension_numbers = #tpu.dot_dimension_numbers<[1], [0], [0], [1], [0, 0, 1, 1], [], []>} : vector<64x128xbf16>, vector<128x128xbf16>, vector<64x128xf32> -> vector<64x128xf32>
    %28 = arith.addf %19, %27 : vector<64x128xf32>
    %c0_i32_23 = arith.constant 0 : i32
    %29 = arith.addi %0, %c0_i32_23 : i32
    %c0_24 = arith.constant 0 : index
    %c2_25 = arith.constant 2 : index
    %30 = arith.index_cast %29 : i32 to index
    %c0_26 = arith.constant 0 : index
    %c0_27 = arith.constant 0 : index
    %31 = vector.load %arg2[%c0_24, %c2_25, %30, %c0_26, %c0_27] : memref<1x4x9x9x128xbf16, #tpu.memory_space<vmem>>, vector<1x1x8x8x128xbf16>
    %32 = vector.shape_cast %31 : vector<1x1x8x8x128xbf16> to vector<8x8x128xbf16>
    %33 = vector.shape_cast %32 : vector<8x8x128xbf16> to vector<64x128xbf16>
    %c3 = arith.constant 3 : index
    %c0_28 = arith.constant 0 : index
    %c0_29 = arith.constant 0 : index
    %34 = vector.load %arg3[%c3, %c0_28, %c0_29] : memref<9x128x128xbf16, #tpu.memory_space<vmem>>, vector<1x128x128xbf16>
    %35 = vector.shape_cast %34 : vector<1x128x128xbf16> to vector<128x128xbf16>
    %cst_30 = arith.constant dense<0.000000e+00> : vector<64x128xf32>
    %36 = tpu.matmul %33, %35, %cst_30 {dimension_numbers = #tpu.dot_dimension_numbers<[1], [0], [0], [1], [0, 0, 1, 1], [], []>} : vector<64x128xbf16>, vector<128x128xbf16>, vector<64x128xf32> -> vector<64x128xf32>
    %37 = arith.addf %28, %36 : vector<64x128xf32>
    %c0_i32_31 = arith.constant 0 : i32
    %38 = arith.addi %0, %c0_i32_31 : i32
    %c0_32 = arith.constant 0 : index
    %c3_33 = arith.constant 3 : index
    %39 = arith.index_cast %38 : i32 to index
    %c0_34 = arith.constant 0 : index
    %c0_35 = arith.constant 0 : index
    %40 = vector.load %arg2[%c0_32, %c3_33, %39, %c0_34, %c0_35] : memref<1x4x9x9x128xbf16, #tpu.memory_space<vmem>>, vector<1x1x8x8x128xbf16>
    %41 = vector.shape_cast %40 : vector<1x1x8x8x128xbf16> to vector<8x8x128xbf16>
    %42 = vector.shape_cast %41 : vector<8x8x128xbf16> to vector<64x128xbf16>
    %c4 = arith.constant 4 : index
    %c0_36 = arith.constant 0 : index
    %c0_37 = arith.constant 0 : index
    %43 = vector.load %arg3[%c4, %c0_36, %c0_37] : memref<9x128x128xbf16, #tpu.memory_space<vmem>>, vector<1x128x128xbf16>
    %44 = vector.shape_cast %43 : vector<1x128x128xbf16> to vector<128x128xbf16>
    %cst_38 = arith.constant dense<0.000000e+00> : vector<64x128xf32>
    %45 = tpu.matmul %42, %44, %cst_38 {dimension_numbers = #tpu.dot_dimension_numbers<[1], [0], [0], [1], [0, 0, 1, 1], [], []>} : vector<64x128xbf16>, vector<128x128xbf16>, vector<64x128xf32> -> vector<64x128xf32>
    %46 = arith.addf %37, %45 : vector<64x128xf32>
    %c0_i32_39 = arith.constant 0 : i32
    %47 = arith.addi %0, %c0_i32_39 : i32
    %c0_40 = arith.constant 0 : index
    %c2_41 = arith.constant 2 : index
    %48 = arith.index_cast %47 : i32 to index
    %c1_42 = arith.constant 1 : index
    %c0_43 = arith.constant 0 : index
    %49 = vector.load %arg2[%c0_40, %c2_41, %48, %c1_42, %c0_43] : memref<1x4x9x9x128xbf16, #tpu.memory_space<vmem>>, vector<1x1x8x8x128xbf16>
    %50 = vector.shape_cast %49 : vector<1x1x8x8x128xbf16> to vector<8x8x128xbf16>
    %51 = vector.shape_cast %50 : vector<8x8x128xbf16> to vector<64x128xbf16>
    %c5 = arith.constant 5 : index
    %c0_44 = arith.constant 0 : index
    %c0_45 = arith.constant 0 : index
    %52 = vector.load %arg3[%c5, %c0_44, %c0_45] : memref<9x128x128xbf16, #tpu.memory_space<vmem>>, vector<1x128x128xbf16>
    %53 = vector.shape_cast %52 : vector<1x128x128xbf16> to vector<128x128xbf16>
    %cst_46 = arith.constant dense<0.000000e+00> : vector<64x128xf32>
    %54 = tpu.matmul %51, %53, %cst_46 {dimension_numbers = #tpu.dot_dimension_numbers<[1], [0], [0], [1], [0, 0, 1, 1], [], []>} : vector<64x128xbf16>, vector<128x128xbf16>, vector<64x128xf32> -> vector<64x128xf32>
    %55 = arith.addf %46, %54 : vector<64x128xf32>
    %c1_i32 = arith.constant 1 : i32
    %56 = arith.addi %0, %c1_i32 : i32
    %c0_47 = arith.constant 0 : index
    %c0_48 = arith.constant 0 : index
    %57 = arith.index_cast %56 : i32 to index
    %c0_49 = arith.constant 0 : index
    %c0_50 = arith.constant 0 : index
    %58 = vector.load %arg2[%c0_47, %c0_48, %57, %c0_49, %c0_50] : memref<1x4x9x9x128xbf16, #tpu.memory_space<vmem>>, vector<1x1x8x8x128xbf16>
    %59 = vector.shape_cast %58 : vector<1x1x8x8x128xbf16> to vector<8x8x128xbf16>
    %60 = vector.shape_cast %59 : vector<8x8x128xbf16> to vector<64x128xbf16>
    %c6 = arith.constant 6 : index
    %c0_51 = arith.constant 0 : index
    %c0_52 = arith.constant 0 : index
    %61 = vector.load %arg3[%c6, %c0_51, %c0_52] : memref<9x128x128xbf16, #tpu.memory_space<vmem>>, vector<1x128x128xbf16>
    %62 = vector.shape_cast %61 : vector<1x128x128xbf16> to vector<128x128xbf16>
    %cst_53 = arith.constant dense<0.000000e+00> : vector<64x128xf32>
    %63 = tpu.matmul %60, %62, %cst_53 {dimension_numbers = #tpu.dot_dimension_numbers<[1], [0], [0], [1], [0, 0, 1, 1], [], []>} : vector<64x128xbf16>, vector<128x128xbf16>, vector<64x128xf32> -> vector<64x128xf32>
    %64 = arith.addf %55, %63 : vector<64x128xf32>
    %c1_i32_54 = arith.constant 1 : i32
    %65 = arith.addi %0, %c1_i32_54 : i32
    %c0_55 = arith.constant 0 : index
    %c1_56 = arith.constant 1 : index
    %66 = arith.index_cast %65 : i32 to index
    %c0_57 = arith.constant 0 : index
    %c0_58 = arith.constant 0 : index
    %67 = vector.load %arg2[%c0_55, %c1_56, %66, %c0_57, %c0_58] : memref<1x4x9x9x128xbf16, #tpu.memory_space<vmem>>, vector<1x1x8x8x128xbf16>
    %68 = vector.shape_cast %67 : vector<1x1x8x8x128xbf16> to vector<8x8x128xbf16>
    %69 = vector.shape_cast %68 : vector<8x8x128xbf16> to vector<64x128xbf16>
    %c7 = arith.constant 7 : index
    %c0_59 = arith.constant 0 : index
    %c0_60 = arith.constant 0 : index
    %70 = vector.load %arg3[%c7, %c0_59, %c0_60] : memref<9x128x128xbf16, #tpu.memory_space<vmem>>, vector<1x128x128xbf16>
    %71 = vector.shape_cast %70 : vector<1x128x128xbf16> to vector<128x128xbf16>
    %cst_61 = arith.constant dense<0.000000e+00> : vector<64x128xf32>
    %72 = tpu.matmul %69, %71, %cst_61 {dimension_numbers = #tpu.dot_dimension_numbers<[1], [0], [0], [1], [0, 0, 1, 1], [], []>} : vector<64x128xbf16>, vector<128x128xbf16>, vector<64x128xf32> -> vector<64x128xf32>
    %73 = arith.addf %64, %72 : vector<64x128xf32>
    %c1_i32_62 = arith.constant 1 : i32
    %74 = arith.addi %0, %c1_i32_62 : i32
    %c0_63 = arith.constant 0 : index
    %c0_64 = arith.constant 0 : index
    %75 = arith.index_cast %74 : i32 to index
    %c1_65 = arith.constant 1 : index
    %c0_66 = arith.constant 0 : index
    %76 = vector.load %arg2[%c0_63, %c0_64, %75, %c1_65, %c0_66] : memref<1x4x9x9x128xbf16, #tpu.memory_space<vmem>>, vector<1x1x8x8x128xbf16>
    %77 = vector.shape_cast %76 : vector<1x1x8x8x128xbf16> to vector<8x8x128xbf16>
    %78 = vector.shape_cast %77 : vector<8x8x128xbf16> to vector<64x128xbf16>
    %c8 = arith.constant 8 : index
    %c0_67 = arith.constant 0 : index
    %c0_68 = arith.constant 0 : index
    %79 = vector.load %arg3[%c8, %c0_67, %c0_68] : memref<9x128x128xbf16, #tpu.memory_space<vmem>>, vector<1x128x128xbf16>
    %80 = vector.shape_cast %79 : vector<1x128x128xbf16> to vector<128x128xbf16>
    %cst_69 = arith.constant dense<0.000000e+00> : vector<64x128xf32>
    %81 = tpu.matmul %78, %80, %cst_69 {dimension_numbers = #tpu.dot_dimension_numbers<[1], [0], [0], [1], [0, 0, 1, 1], [], []>} : vector<64x128xbf16>, vector<128x128xbf16>, vector<64x128xf32> -> vector<64x128xf32>
    %82 = arith.addf %73, %81 : vector<64x128xf32>
    %c0_70 = arith.constant 0 : index
    %c0_71 = arith.constant 0 : index
    %83 = vector.load %arg4[%c0_70, %c0_71] : memref<1x128xf32, #tpu.memory_space<vmem>>, vector<1x128xf32>
    %84 = vector.broadcast %83 : vector<1x128xf32> to vector<64x128xf32>
    %85 = arith.addf %82, %84 : vector<64x128xf32>
    %cst_72 = arith.constant 0.000000e+00 : f32
    %86 = vector.broadcast %cst_72 : f32 to vector<64x128xf32>
    %87 = arith.maximumf %85, %86 : vector<64x128xf32>
    %88 = arith.truncf %87 : vector<64x128xf32> to vector<64x128xbf16>
    %c0_73 = arith.constant 0 : index
    %c0_74 = arith.constant 0 : index
    %c0_75 = arith.constant 0 : index
    %89 = vector.load %arg5[%c0_73, %c0_74, %c0_75] : memref<1x64x128xbf16, #tpu.memory_space<vmem>>, vector<1x64x128xbf16>
    %90 = vector.shape_cast %89 : vector<1x64x128xbf16> to vector<64x128xbf16>
    %91 = vector.shape_cast %88 : vector<64x128xbf16> to vector<1x64x128xbf16>
    tpu.vector_store %arg5[%c0_73, %c0_74, %c0_75], %91 {strides = array<i32>} : memref<1x64x128xbf16, #tpu.memory_space<vmem>>, vector<1x64x128xbf16>,
    return
  }
  func.func @transform_0(%arg0: i32, %arg1: i32) -> (i32, i32, i32, i32, i32) {
    %c0_i32 = arith.constant 0 : i32
    %c0_i32_0 = arith.constant 0 : i32
    %c0_i32_1 = arith.constant 0 : i32
    %c0_i32_2 = arith.constant 0 : i32
    %c0_i32_3 = arith.constant 0 : i32
    return %arg0, %c0_i32, %c0_i32_0, %c0_i32_1, %c0_i32_2 : i32, i32, i32, i32, i32
  }
  func.func @transform_1(%arg0: i32, %arg1: i32) -> (i32, i32, i32) {
    %c0_i32 = arith.constant 0 : i32
    %c0_i32_0 = arith.constant 0 : i32
    %c0_i32_1 = arith.constant 0 : i32
    %c0_i32_2 = arith.constant 0 : i32
    return %c0_i32, %c0_i32_0, %c0_i32_1 : i32, i32, i32
  }
  func.func @transform_2(%arg0: i32, %arg1: i32) -> (i32, i32) {
    %c0_i32 = arith.constant 0 : i32
    %c0_i32_0 = arith.constant 0 : i32
    %c0_i32_1 = arith.constant 0 : i32
    return %c0_i32, %c0_i32_0 : i32, i32
  }
  func.func @transform_3(%arg0: i32, %arg1: i32) -> (i32, i32, i32) {
    %c0_i32 = arith.constant 0 : i32
    %c0_i32_0 = arith.constant 0 : i32
    return %arg0, %arg1, %c0_i32 : i32, i32, i32
  }
}

module attributes {stable_mosaic.version = 11 : i64} {
  func.func @_matmul_bias_res_act_kernel(%arg0: i32, %arg1: memref<128x128xbf16, #tpu.memory_space<vmem>>, %arg2: memref<128x128xbf16, #tpu.memory_space<vmem>>, %arg3: memref<1x128xf32, #tpu.memory_space<vmem>>, %arg4: memref<128x128xbf16, #tpu.memory_space<vmem>>, %arg5: memref<128x128xf32, #tpu.memory_space<vmem>>) attributes {dimension_semantics = [#tpu.dimension_semantics<parallel>], iteration_bounds = array<i64: 1>, scalar_prefetch = 0 : i64, scratch_operands = 0 : i64, tpu.core_type = #tpu.core_type<tc>, window_params = [{transform_indices = @transform_0, window_bounds = array<i64: 128, 128>}, {pipeline_mode = #tpu.pipeline_mode<synchronous>, transform_indices = @transform_1, window_bounds = array<i64: 128, 128>}, {pipeline_mode = #tpu.pipeline_mode<synchronous>, transform_indices = @transform_2, window_bounds = array<i64: 1, 128>}, {transform_indices = @transform_3, window_bounds = array<i64: 128, 128>}, {transform_indices = @transform_4, window_bounds = array<i64: 128, 128>}]} {
    %c0 = arith.constant 0 : index
    %c0_0 = arith.constant 0 : index
    %0 = vector.load %arg1[%c0, %c0_0] : memref<128x128xbf16, #tpu.memory_space<vmem>>, vector<128x128xbf16>
    %c0_1 = arith.constant 0 : index
    %c0_2 = arith.constant 0 : index
    %1 = vector.load %arg2[%c0_1, %c0_2] : memref<128x128xbf16, #tpu.memory_space<vmem>>, vector<128x128xbf16>
    %cst = arith.constant dense<0.000000e+00> : vector<128x128xf32>
    %2 = tpu.matmul %0, %1, %cst {dimension_numbers = #tpu.dot_dimension_numbers<[1], [0], [0], [1], [0, 0, 1, 1], [], []>} : vector<128x128xbf16>, vector<128x128xbf16>, vector<128x128xf32> -> vector<128x128xf32>
    %c0_3 = arith.constant 0 : index
    %c0_4 = arith.constant 0 : index
    %3 = vector.load %arg3[%c0_3, %c0_4] : memref<1x128xf32, #tpu.memory_space<vmem>>, vector<1x128xf32>
    %4 = vector.broadcast %3 : vector<1x128xf32> to vector<128x128xf32>
    %5 = arith.addf %2, %4 : vector<128x128xf32>
    %c0_5 = arith.constant 0 : index
    %c0_6 = arith.constant 0 : index
    %6 = vector.load %arg4[%c0_5, %c0_6] : memref<128x128xbf16, #tpu.memory_space<vmem>>, vector<128x128xbf16>
    %7 = arith.extf %6 : vector<128x128xbf16> to vector<128x128xf32>
    %8 = arith.addf %5, %7 : vector<128x128xf32>
    %cst_7 = arith.constant 0.000000e+00 : f32
    %9 = vector.broadcast %cst_7 : f32 to vector<128x128xf32>
    %10 = arith.maximumf %8, %9 : vector<128x128xf32>
    %c0_8 = arith.constant 0 : index
    %c0_9 = arith.constant 0 : index
    %11 = vector.load %arg5[%c0_8, %c0_9] : memref<128x128xf32, #tpu.memory_space<vmem>>, vector<128x128xf32>
    tpu.vector_store %arg5[%c0_8, %c0_9], %10 {strides = array<i32>} : memref<128x128xf32, #tpu.memory_space<vmem>>, vector<128x128xf32>,
    return
  }
  func.func @transform_0(%arg0: i32) -> (i32, i32) {
    %c0_i32 = arith.constant 0 : i32
    %c0_i32_0 = arith.constant 0 : i32
    return %arg0, %c0_i32 : i32, i32
  }
  func.func @transform_1(%arg0: i32) -> (i32, i32) {
    %c0_i32 = arith.constant 0 : i32
    %c0_i32_0 = arith.constant 0 : i32
    %c0_i32_1 = arith.constant 0 : i32
    return %c0_i32, %c0_i32_0 : i32, i32
  }
  func.func @transform_2(%arg0: i32) -> (i32, i32) {
    %c0_i32 = arith.constant 0 : i32
    %c0_i32_0 = arith.constant 0 : i32
    %c0_i32_1 = arith.constant 0 : i32
    return %c0_i32, %c0_i32_0 : i32, i32
  }
  func.func @transform_3(%arg0: i32) -> (i32, i32) {
    %c0_i32 = arith.constant 0 : i32
    %c0_i32_0 = arith.constant 0 : i32
    return %arg0, %c0_i32 : i32, i32
  }
  func.func @transform_4(%arg0: i32) -> (i32, i32) {
    %c0_i32 = arith.constant 0 : i32
    %c0_i32_0 = arith.constant 0 : i32
    return %arg0, %c0_i32 : i32, i32
  }
}

module attributes {stable_mosaic.version = 11 : i64} {
  func.func @_strided_1x1_kernel(%arg0: i32, %arg1: memref<16x1x8x256xbf16, #tpu.memory_space<vmem>>, %arg2: memref<256x128xbf16, #tpu.memory_space<vmem>>, %arg3: memref<1x128xf32, #tpu.memory_space<vmem>>, %arg4: memref<16x8x128xbf16, #tpu.memory_space<vmem>>) attributes {dimension_semantics = [#tpu.dimension_semantics<parallel>], iteration_bounds = array<i64: 1>, scalar_prefetch = 0 : i64, scratch_operands = 0 : i64, tpu.core_type = #tpu.core_type<tc>, window_params = [{transform_indices = @transform_0, window_bounds = array<i64: 16, 1, 8, 256>}, {pipeline_mode = #tpu.pipeline_mode<synchronous>, transform_indices = @transform_1, window_bounds = array<i64: 256, 128>}, {pipeline_mode = #tpu.pipeline_mode<synchronous>, transform_indices = @transform_2, window_bounds = array<i64: 1, 128>}, {transform_indices = @transform_3, window_bounds = array<i64: 16, 8, 128>}]} {
    %c0 = arith.constant 0 : index
    %c0_0 = arith.constant 0 : index
    %c0_1 = arith.constant 0 : index
    %c0_2 = arith.constant 0 : index
    %0 = vector.load %arg1[%c0, %c0_0, %c0_1, %c0_2] : memref<16x1x8x256xbf16, #tpu.memory_space<vmem>>, vector<16x1x8x256xbf16>
    %1 = vector.shape_cast %0 : vector<16x1x8x256xbf16> to vector<16x8x256xbf16>
    %2 = vector.shape_cast %1 : vector<16x8x256xbf16> to vector<128x256xbf16>
    %c0_3 = arith.constant 0 : index
    %c0_4 = arith.constant 0 : index
    %3 = vector.load %arg2[%c0_3, %c0_4] : memref<256x128xbf16, #tpu.memory_space<vmem>>, vector<256x128xbf16>
    %cst = arith.constant dense<0.000000e+00> : vector<128x128xf32>
    %4 = tpu.matmul %2, %3, %cst {dimension_numbers = #tpu.dot_dimension_numbers<[1], [0], [0], [1], [0, 0, 1, 1], [], []>} : vector<128x256xbf16>, vector<256x128xbf16>, vector<128x128xf32> -> vector<128x128xf32>
    %c0_5 = arith.constant 0 : index
    %c0_6 = arith.constant 0 : index
    %5 = vector.load %arg3[%c0_5, %c0_6] : memref<1x128xf32, #tpu.memory_space<vmem>>, vector<1x128xf32>
    %6 = vector.broadcast %5 : vector<1x128xf32> to vector<128x128xf32>
    %7 = arith.addf %4, %6 : vector<128x128xf32>
    %8 = vector.shape_cast %7 : vector<128x128xf32> to vector<16x8x128xf32>
    %9 = arith.truncf %8 : vector<16x8x128xf32> to vector<16x8x128xbf16>
    %c0_7 = arith.constant 0 : index
    %c0_8 = arith.constant 0 : index
    %c0_9 = arith.constant 0 : index
    %10 = vector.load %arg4[%c0_7, %c0_8, %c0_9] : memref<16x8x128xbf16, #tpu.memory_space<vmem>>, vector<16x8x128xbf16>
    tpu.vector_store %arg4[%c0_7, %c0_8, %c0_9], %9 {strides = array<i32>} : memref<16x8x128xbf16, #tpu.memory_space<vmem>>, vector<16x8x128xbf16>,
    return
  }
  func.func @transform_0(%arg0: i32) -> (i32, i32, i32, i32) {
    %c0_i32 = arith.constant 0 : i32
    %c0_i32_0 = arith.constant 0 : i32
    %c0_i32_1 = arith.constant 0 : i32
    %c0_i32_2 = arith.constant 0 : i32
    return %arg0, %c0_i32, %c0_i32_0, %c0_i32_1 : i32, i32, i32, i32
  }
  func.func @transform_1(%arg0: i32) -> (i32, i32) {
    %c0_i32 = arith.constant 0 : i32
    %c0_i32_0 = arith.constant 0 : i32
    %c0_i32_1 = arith.constant 0 : i32
    return %c0_i32, %c0_i32_0 : i32, i32
  }
  func.func @transform_2(%arg0: i32) -> (i32, i32) {
    %c0_i32 = arith.constant 0 : i32
    %c0_i32_0 = arith.constant 0 : i32
    %c0_i32_1 = arith.constant 0 : i32
    return %c0_i32, %c0_i32_0 : i32, i32
  }
  func.func @transform_3(%arg0: i32) -> (i32, i32, i32) {
    %c0_i32 = arith.constant 0 : i32
    %c0_i32_0 = arith.constant 0 : i32
    %c0_i32_1 = arith.constant 0 : i32
    return %arg0, %c0_i32, %c0_i32_0 : i32, i32, i32
  }
}

</mosaic_0001>

<bundles_post_ra>
// kernel: bottleneck_forward.5
= control target key start
LH: loop header
LB: loop body
LE: loop exit
PB: predicated region body
PF: predicated region fallthrough
CT: control target
= control target key end

     0   :  { %s1860_s1 = inlined_call_operand.vmem [shape: bf16[128,128], index: 1, kind: input, shape index: {}]   ;;  %s1861_s0 = inlined_call_operand.vmem [shape: bf16[512,128], index: 0, kind: input, shape index: {}]   ;;  %s1862_s2 = inlined_call_operand.vmem [shape: f32[1,128], index: 2, kind: input, shape index: {}]   ;;  %s1863_s3 = inlined_call_operand.vmem [shape: bf16[512,128], index: 3, kind: output, shape index: {}]  }
   0x1   :  { %v1515_v0 = vld [vmem:[%s1860_s1] sm:$0xff]   ;;  %v1516_v1 = vld [vmem:[%s1860_s1 + $0x8] sm:$0xff]   ;;  %v1517_v2 = vld [vmem:[%s1860_s1 + $0x10] sm:$0xff]  }
   0x2   :  { %1419 = vmatprep.subr.bf16.mxu0 %v1515_v0  ;;  %1499 = vmatprep.subr.bf16.mxu1 %v1515_v0  ;;  %v1518_v3 = vld [vmem:[%s1860_s1 + $0x18] sm:$0xff]   ;;  %v1523_v4 = vld [vmem:[%s1861_s0] sm:$0xff]   ;;  %v1520_v7 = vld [vmem:[%s1860_s1 + $0x28] sm:$0xff]  }
   0x3   :  { %1420 = vmatpush3.bf16.msra.mxu0 %v1515_v0  ;;  %1507 = vmatpush3.bf16.msra.mxu1 %v1515_v0  ;;  %v1524_v5 = vld [vmem:[%s1861_s0 + $0x80] sm:$0xff]   ;;  %v1521_v8 = vld [vmem:[%s1860_s1 + $0x30] sm:$0xff]   ;;  %v1522_v9 = vld [vmem:[%s1860_s1 + $0x38] sm:$0xff]  }
   0x4   :  { %1421 = vmatprep.subr.bf16.mxu0 %v1516_v1  ;;  %1500 = vmatprep.subr.bf16.mxu1 %v1516_v1  ;;  %v1519_v6 = vld [vmem:[%s1860_s1 + $0x20] sm:$0xff]   ;;  %v1525_v10 = vld [vmem:[%s1861_s0 + $0x8] sm:$0xff]   ;;  %v1527_v12 = vld [vmem:[%s1861_s0 + $0x10] sm:$0xff]  }
   0x5   :  { %1435 = vmatprep.mubr.bf16.mxu0 %v1523_v4  ;;  %1467 = vmatprep.mubr.bf16.mxu1 %v1524_v5  ;;  %v1526_v11 = vld [vmem:[%s1861_s0 + $0x88] sm:$0xff]   ;;  %v1528_v13 = vld [vmem:[%s1861_s0 + $0x90] sm:$0xff]   ;;  %v1529_v14 = vld [vmem:[%s1861_s0 + $0x18] sm:$0xff]  }
   0x6   :  { %v1530_v15 = vld [vmem:[%s1861_s0 + $0x98] sm:$0xff]   ;;  %v1531_v16 = vld [vmem:[%s1861_s0 + $0x20] sm:$0xff]   ;;  %v1533_v18 = vld [vmem:[%s1861_s0 + $0x28] sm:$0xff]  }
   0x7   :  { %1422 = vmatpush3.bf16.msra.mxu0 %v1516_v1  ;;  %1508 = vmatpush3.bf16.msra.mxu1 %v1516_v1  ;;  %v1532_v17 = vld [vmem:[%s1861_s0 + $0xa0] sm:$0xff]   ;;  %v1534_v19 = vld [vmem:[%s1861_s0 + $0xa8] sm:$0xff]   ;;  %v1535_v20 = vld [vmem:[%s1861_s0 + $0x30] sm:$0xff]  }
   0x8   :  { %1423 = vmatprep.subr.bf16.mxu0 %v1517_v2  ;;  %1501 = vmatprep.subr.bf16.mxu1 %v1517_v2  ;;  %v1536_v21 = vld [vmem:[%s1861_s0 + $0xb0] sm:$0xff]   ;;  %v1537_v22 = vld [vmem:[%s1861_s0 + $0x38] sm:$0xff]   ;;  %v1539_v24 = vld [vmem:[%s1861_s0 + $0x40] sm:$0xff]  }
   0x9   :  { %v1538_v23 = vld [vmem:[%s1861_s0 + $0xb8] sm:$0xff]   ;;  %v1540_v25 = vld [vmem:[%s1861_s0 + $0xc0] sm:$0xff]   ;;  %v1541_v26 = vld [vmem:[%s1861_s0 + $0x48] sm:$0xff]  }
   0xa   :  { %v1542_v27 = vld [vmem:[%s1861_s0 + $0xc8] sm:$0xff]   ;;  %v1543_v28 = vld [vmem:[%s1861_s0 + $0x50] sm:$0xff]   ;;  %v1545_v30 = vld [vmem:[%s1861_s0 + $0x58] sm:$0xff]  }
   0xb   :  { %1424 = vmatpush3.bf16.msra.mxu0 %v1517_v2  ;;  %1509 = vmatpush3.bf16.msra.mxu1 %v1517_v2  ;;  %v1544_v29 = vld [vmem:[%s1861_s0 + $0xd0] sm:$0xff]   ;;  %v1546_v31 = vld [vmem:[%s1861_s0 + $0xd8] sm:$0xff]   ;;  %v1547_v32 = vld [vmem:[%s1861_s0 + $0x60] sm:$0xff]  }
   0xc   :  { %1425 = vmatprep.subr.bf16.mxu0 %v1518_v3  ;;  %1502 = vmatprep.subr.bf16.mxu1 %v1518_v3  ;;  %v1548_v33 = vld [vmem:[%s1861_s0 + $0xe0] sm:$0xff]   ;;  %v1549_v34 = vld [vmem:[%s1861_s0 + $0x68] sm:$0xff]   ;;  %v1551_v36 = vld [vmem:[%s1861_s0 + $0x70] sm:$0xff]  }
   0xd   :  { %v1550_v35 = vld [vmem:[%s1861_s0 + $0xe8] sm:$0xff]   ;;  %v1552_v37 = vld [vmem:[%s1861_s0 + $0xf0] sm:$0xff]   ;;  %v1553_v38 = vld [vmem:[%s1861_s0 + $0x78] sm:$0xff]  }
   0xe   :  { %v1554_v39 = vld [vmem:[%s1861_s0 + $0xf8] sm:$0xff]   ;;  %v1698_v40 = vld [vmem:[%s1862_s2] ss:$0 sm:$0xff] }
   0xf   :  { %1426 = vmatpush3.bf16.msra.mxu0 %v1518_v3  ;;  %1510 = vmatpush3.bf16.msra.mxu1 %v1518_v3 }
  0x10   :  { %1427 = vmatprep.subr.bf16.mxu0 %v1519_v6  ;;  %1503 = vmatprep.subr.bf16.mxu1 %v1519_v6 }
  0x13   :  { %1428 = vmatpush3.bf16.msra.mxu0 %v1519_v6  ;;  %1511 = vmatpush3.bf16.msra.mxu1 %v1519_v6 }
  0x14   :  { %1429 = vmatprep.subr.bf16.mxu0 %v1520_v7  ;;  %1504 = vmatprep.subr.bf16.mxu1 %v1520_v7 }
  0x17   :  { %1430 = vmatpush3.bf16.msra.mxu0 %v1520_v7  ;;  %1512 = vmatpush3.bf16.msra.mxu1 %v1520_v7 }
  0x18   :  { %1431 = vmatprep.subr.bf16.mxu0 %v1521_v8  ;;  %1505 = vmatprep.subr.bf16.mxu1 %v1521_v8 }
  0x1b   :  { %1432 = vmatpush3.bf16.msra.mxu0 %v1521_v8  ;;  %1513 = vmatpush3.bf16.msra.mxu1 %v1521_v8 }
  0x1c   :  { %1433 = vmatprep.subr.bf16.mxu0 %v1522_v9  ;;  %1506 = vmatprep.subr.bf16.mxu1 %v1522_v9 }
  0x1f   :  { %1434 = vmatpush3.bf16.msra.mxu0 %v1522_v9  ;;  %1514 = vmatpush3.bf16.msra.mxu1 %v1522_v9 }
  0x22   :  { %1436 = vmatmul.mubr.bf16.vlgmr.msra.gmra.mrb[0].mxu0 %v1525_v10  ;;  %1468 = vmatmul.mubr.bf16.vlgmr.msra.gmra.mrb[0].mxu1 %v1526_v11 }
  0x23   :  { %1439 = vmatprep.mubr.bf16.mxu0 %v1527_v12  ;;  %1471 = vmatprep.mubr.bf16.mxu1 %v1528_v13 }
  0x2a   :  { %1440 = vmatmul.mubr.bf16.gmra.mrb[4].mxu0 %v1529_v14  ;;  %1472 = vmatmul.mubr.bf16.gmra.mrb[4].mxu1 %v1530_v15 }
  0x2b   :  { %1443 = vmatprep.mubr.bf16.mxu0 %v1531_v16  ;;  %1475 = vmatprep.mubr.bf16.mxu1 %v1532_v17 }
  0x32   :  { %1444 = vmatmul.mubr.bf16.gmra.mrb[8].mxu0 %v1533_v18  ;;  %1476 = vmatmul.mubr.bf16.gmra.mrb[8].mxu1 %v1534_v19 }
  0x33   :  { %1447 = vmatprep.mubr.bf16.mxu0 %v1535_v20  ;;  %1479 = vmatprep.mubr.bf16.mxu1 %v1536_v21 }
  0x3a   :  { %1448 = vmatmul.mubr.bf16.gmra.mrb[12].mxu0 %v1537_v22  ;;  %1480 = vmatmul.mubr.bf16.gmra.mrb[12].mxu1 %v1538_v23 }
  0x3b   :  { %1451 = vmatprep.mubr.bf16.mxu0 %v1539_v24  ;;  %1483 = vmatprep.mubr.bf16.mxu1 %v1540_v25 }
  0x42   :  { %1452 = vmatmul.mubr.bf16.gmra.mrb[16].mxu0 %v1541_v26  ;;  %1484 = vmatmul.mubr.bf16.gmra.mrb[16].mxu1 %v1542_v27 }
  0x43   :  { %1455 = vmatprep.mubr.bf16.mxu0 %v1543_v28  ;;  %1487 = vmatprep.mubr.bf16.mxu1 %v1544_v29 }
  0x4a   :  { %1456 = vmatmul.mubr.bf16.gmra.mrb[20].mxu0 %v1545_v30  ;;  %1488 = vmatmul.mubr.bf16.gmra.mrb[20].mxu1 %v1546_v31 }
  0x4b   :  { %1459 = vmatprep.mubr.bf16.mxu0 %v1547_v32  ;;  %1491 = vmatprep.mubr.bf16.mxu1 %v1548_v33 }
  0x52   :  { %1460 = vmatmul.mubr.bf16.gmra.mrb[24].mxu0 %v1549_v34  ;;  %1492 = vmatmul.mubr.bf16.gmra.mrb[24].mxu1 %v1550_v35 }
  0x53   :  { %1463 = vmatprep.mubr.bf16.mxu0 %v1551_v36  ;;  %1495 = vmatprep.mubr.bf16.mxu1 %v1552_v37 }
  0x5a   :  { %1464 = vmatmul.mubr.bf16.gmra.mrb[28].mxu0 %v1553_v38  ;;  %1496 = vmatmul.mubr.bf16.gmra.mrb[28].mxu1 %v1554_v39 }
  0xf5   :  { %v1437_v41 = vpop.f32.mrb[0].mxu0  ;;  %v1469_v42 = vpop.f32.mrb[0].mxu1 }
  0xf6   :  { %v385_v43 = vadd.f32 %v1437_v41, %v1698_v40  ;;  %v513_v44 = vadd.f32 %v1469_v42, %v1698_v40  ;;  %v376_v45 = vpop.f32.mrb[1].mxu0  ;;  %v504_v46 = vpop.f32.mrb[1].mxu1 }
  0xf7   :  { %v377_v47 = vadd.f32 %v1698_v40, %v376_v45  ;;  %v505_v48 = vadd.f32 %v1698_v40, %v504_v46  ;;  %v1438_v49 = vpop.f32.mrb[2].mxu0  ;;  %v1470_v50 = vpop.f32.mrb[2].mxu1 }
  0xf8   :  { %v388_v51 = vadd.f32 %v1438_v49, %v1698_v40  ;;  %v516_v52 = vadd.f32 %v1470_v50, %v1698_v40  ;;  %v379_v53 = vpop.f32.mrb[3].mxu0  ;;  %v507_v54 = vpop.f32.mrb[3].mxu1  ;;  %v633_v57 = vmax.f32 %v385_v43, 0.0  ;;  %v665_v58 = vmax.f32 %v513_v44, 0.0 }
  0xf9   :  { %v380_v55 = vadd.f32 %v1698_v40, %v379_v53  ;;  %v508_v56 = vadd.f32 %v1698_v40, %v507_v54  ;;  %v631_v61 = vmax.f32 %v377_v47, 0.0  ;;  %v663_v62 = vmax.f32 %v505_v48, 0.0 }
  0xfa   :  { %v634_v59 = vmax.f32 %v388_v51, 0.0  ;;  %v666_v60 = vmax.f32 %v516_v52, 0.0 }
  0xfb   :  { %v632_v63 = vmax.f32 %v380_v55, 0.0  ;;  %v664_v0 = vmax.f32 %v508_v56, 0.0 }
  0xfc   :  { %v1196_v1 = vpack.c.bf16 %v634_v59, %v633_v57  ;;  %v1276_v2 = vpack.c.bf16 %v666_v60, %v665_v58 }
  0xfd   :  { %v1191_v3 = vpack.c.bf16 %v632_v63, %v631_v61  ;;  %v1271_v4 = vpack.c.bf16 %v664_v0, %v663_v62  ;;  %v1441_v5 = vpop.f32.mrb[4].mxu0  ;;  %v1473_v6 = vpop.f32.mrb[4].mxu1 }
  0xfe   :  { %1348 = vst [vmem:[%s1863_s3 + $0x8] sm:$0xff] %v1196_v1   ;;  %1364 = vst [vmem:[%s1863_s3 + $0x88] sm:$0xff] %v1276_v2   ;;  %v401_v7 = vadd.f32 %v1441_v5, %v1698_v40  ;;  %v529_v8 = vadd.f32 %v1473_v6, %v1698_v40  ;;  %v392_v9 = vpop.f32.mrb[5].mxu0  ;;  %v520_v10 = vpop.f32.mrb[5].mxu1 }
  0xff   :  { %1192 = vst [vmem:[%s1863_s3] sm:$0xff] %v1191_v3   ;;  %1363 = vst [vmem:[%s1863_s3 + $0x80] sm:$0xff] %v1271_v4   ;;  %v393_v11 = vadd.f32 %v1698_v40, %v392_v9  ;;  %v521_v12 = vadd.f32 %v1698_v40, %v520_v10  ;;  %v1442_v13 = vpop.f32.mrb[6].mxu0  ;;  %v1474_v14 = vpop.f32.mrb[6].mxu1 }
 0x100   :  { %v404_v15 = vadd.f32 %v1442_v13, %v1698_v40  ;;  %v532_v16 = vadd.f32 %v1474_v14, %v1698_v40  ;;  %v395_v17 = vpop.f32.mrb[7].mxu0  ;;  %v523_v18 = vpop.f32.mrb[7].mxu1  ;;  %v637_v21 = vmax.f32 %v401_v7, 0.0  ;;  %v669_v22 = vmax.f32 %v529_v8, 0.0 }
 0x101   :  { %v396_v19 = vadd.f32 %v1698_v40, %v395_v17  ;;  %v524_v20 = vadd.f32 %v1698_v40, %v523_v18  ;;  %v635_v25 = vmax.f32 %v393_v11, 0.0  ;;  %v667_v26 = vmax.f32 %v521_v12, 0.0 }
 0x102   :  { %v638_v23 = vmax.f32 %v404_v15, 0.0  ;;  %v670_v24 = vmax.f32 %v532_v16, 0.0 }
 0x103   :  { %v636_v27 = vmax.f32 %v396_v19, 0.0  ;;  %v668_v28 = vmax.f32 %v524_v20, 0.0 }
 0x104   :  { %v1206_v29 = vpack.c.bf16 %v638_v23, %v637_v21  ;;  %v1286_v30 = vpack.c.bf16 %v670_v24, %v669_v22 }
 0x105   :  { %v1201_v31 = vpack.c.bf16 %v636_v27, %v635_v25  ;;  %v1281_v32 = vpack.c.bf16 %v668_v28, %v667_v26  ;;  %v1445_v33 = vpop.f32.mrb[8].mxu0  ;;  %v1477_v34 = vpop.f32.mrb[8].mxu1 }
 0x106   :  { %1350 = vst [vmem:[%s1863_s3 + $0x18] sm:$0xff] %v1206_v29   ;;  %1366 = vst [vmem:[%s1863_s3 + $0x98] sm:$0xff] %v1286_v30   ;;  %v417_v35 = vadd.f32 %v1445_v33, %v1698_v40  ;;  %v545_v36 = vadd.f32 %v1477_v34, %v1698_v40  ;;  %v408_v37 = vpop.f32.mrb[9].mxu0  ;;  %v536_v38 = vpop.f32.mrb[9].mxu1 }
 0x107   :  { %1349 = vst [vmem:[%s1863_s3 + $0x10] sm:$0xff] %v1201_v31   ;;  %1365 = vst [vmem:[%s1863_s3 + $0x90] sm:$0xff] %v1281_v32   ;;  %v409_v39 = vadd.f32 %v1698_v40, %v408_v37  ;;  %v537_v41 = vadd.f32 %v1698_v40, %v536_v38  ;;  %v1446_v42 = vpop.f32.mrb[10].mxu0  ;;  %v1478_v43 = vpop.f32.mrb[10].mxu1 }
 0x108   :  { %v420_v44 = vadd.f32 %v1446_v42, %v1698_v40  ;;  %v548_v45 = vadd.f32 %v1478_v43, %v1698_v40  ;;  %v411_v46 = vpop.f32.mrb[11].mxu0  ;;  %v539_v47 = vpop.f32.mrb[11].mxu1  ;;  %v641_v50 = vmax.f32 %v417_v35, 0.0  ;;  %v673_v51 = vmax.f32 %v545_v36, 0.0 }
 0x109   :  { %v412_v48 = vadd.f32 %v1698_v40, %v411_v46  ;;  %v540_v49 = vadd.f32 %v1698_v40, %v539_v47  ;;  %v639_v54 = vmax.f32 %v409_v39, 0.0  ;;  %v671_v55 = vmax.f32 %v537_v41, 0.0 }
 0x10a   :  { %v642_v52 = vmax.f32 %v420_v44, 0.0  ;;  %v674_v53 = vmax.f32 %v548_v45, 0.0 }
 0x10b   :  { %v640_v56 = vmax.f32 %v412_v48, 0.0  ;;  %v672_v57 = vmax.f32 %v540_v49, 0.0 }
 0x10c   :  { %v1216_v58 = vpack.c.bf16 %v642_v52, %v641_v50  ;;  %v1296_v59 = vpack.c.bf16 %v674_v53, %v673_v51 }
 0x10d   :  { %v1211_v60 = vpack.c.bf16 %v640_v56, %v639_v54  ;;  %v1291_v61 = vpack.c.bf16 %v672_v57, %v671_v55  ;;  %v1449_v62 = vpop.f32.mrb[12].mxu0  ;;  %v1481_v63 = vpop.f32.mrb[12].mxu1 }
 0x10e   :  { %1352 = vst [vmem:[%s1863_s3 + $0x28] sm:$0xff] %v1216_v58   ;;  %1368 = vst [vmem:[%s1863_s3 + $0xa8] sm:$0xff] %v1296_v59   ;;  %v433_v0 = vadd.f32 %v1449_v62, %v1698_v40  ;;  %v561_v1 = vadd.f32 %v1481_v63, %v1698_v40  ;;  %v424_v2 = vpop.f32.mrb[13].mxu0  ;;  %v552_v3 = vpop.f32.mrb[13].mxu1 }
 0x10f   :  { %1351 = vst [vmem:[%s1863_s3 + $0x20] sm:$0xff] %v1211_v60   ;;  %1367 = vst [vmem:[%s1863_s3 + $0xa0] sm:$0xff] %v1291_v61   ;;  %v425_v4 = vadd.f32 %v1698_v40, %v424_v2  ;;  %v553_v5 = vadd.f32 %v1698_v40, %v552_v3  ;;  %v1450_v6 = vpop.f32.mrb[14].mxu0  ;;  %v1482_v7 = vpop.f32.mrb[14].mxu1 }
 0x110   :  { %v436_v8 = vadd.f32 %v1450_v6, %v1698_v40  ;;  %v564_v9 = vadd.f32 %v1482_v7, %v1698_v40  ;;  %v427_v10 = vpop.f32.mrb[15].mxu0  ;;  %v555_v11 = vpop.f32.mrb[15].mxu1  ;;  %v645_v14 = vmax.f32 %v433_v0, 0.0  ;;  %v677_v15 = vmax.f32 %v561_v1, 0.0 }
 0x111   :  { %v428_v12 = vadd.f32 %v1698_v40, %v427_v10  ;;  %v556_v13 = vadd.f32 %v1698_v40, %v555_v11  ;;  %v643_v18 = vmax.f32 %v425_v4, 0.0  ;;  %v675_v19 = vmax.f32 %v553_v5, 0.0 }
 0x112   :  { %v646_v16 = vmax.f32 %v436_v8, 0.0  ;;  %v678_v17 = vmax.f32 %v564_v9, 0.0 }
 0x113   :  { %v644_v20 = vmax.f32 %v428_v12, 0.0  ;;  %v676_v21 = vmax.f32 %v556_v13, 0.0 }
 0x114   :  { %v1226_v22 = vpack.c.bf16 %v646_v16, %v645_v14  ;;  %v1306_v23 = vpack.c.bf16 %v678_v17, %v677_v15 }
 0x115   :  { %v1221_v24 = vpack.c.bf16 %v644_v20, %v643_v18  ;;  %v1301_v25 = vpack.c.bf16 %v676_v21, %v675_v19  ;;  %v1453_v26 = vpop.f32.mrb[16].mxu0  ;;  %v1485_v27 = vpop.f32.mrb[16].mxu1 }
 0x116   :  { %1354 = vst [vmem:[%s1863_s3 + $0x38] sm:$0xff] %v1226_v22   ;;  %1370 = vst [vmem:[%s1863_s3 + $0xb8] sm:$0xff] %v1306_v23   ;;  %v449_v28 = vadd.f32 %v1453_v26, %v1698_v40  ;;  %v577_v29 = vadd.f32 %v1485_v27, %v1698_v40  ;;  %v440_v30 = vpop.f32.mrb[17].mxu0  ;;  %v568_v31 = vpop.f32.mrb[17].mxu1 }
 0x117   :  { %1353 = vst [vmem:[%s1863_s3 + $0x30] sm:$0xff] %v1221_v24   ;;  %1369 = vst [vmem:[%s1863_s3 + $0xb0] sm:$0xff] %v1301_v25   ;;  %v441_v32 = vadd.f32 %v1698_v40, %v440_v30  ;;  %v569_v33 = vadd.f32 %v1698_v40, %v568_v31  ;;  %v1454_v34 = vpop.f32.mrb[18].mxu0  ;;  %v1486_v35 = vpop.f32.mrb[18].mxu1 }
 0x118   :  { %v452_v36 = vadd.f32 %v1454_v34, %v1698_v40  ;;  %v580_v37 = vadd.f32 %v1486_v35, %v1698_v40  ;;  %v443_v38 = vpop.f32.mrb[19].mxu0  ;;  %v571_v39 = vpop.f32.mrb[19].mxu1  ;;  %v649_v43 = vmax.f32 %v449_v28, 0.0  ;;  %v681_v44 = vmax.f32 %v577_v29, 0.0 }
 0x119   :  { %v444_v41 = vadd.f32 %v1698_v40, %v443_v38  ;;  %v572_v42 = vadd.f32 %v1698_v40, %v571_v39  ;;  %v647_v47 = vmax.f32 %v441_v32, 0.0  ;;  %v679_v48 = vmax.f32 %v569_v33, 0.0 }
 0x11a   :  { %v650_v45 = vmax.f32 %v452_v36, 0.0  ;;  %v682_v46 = vmax.f32 %v580_v37, 0.0 }
 0x11b   :  { %v648_v49 = vmax.f32 %v444_v41, 0.0  ;;  %v680_v50 = vmax.f32 %v572_v42, 0.0 }
 0x11c   :  { %v1236_v51 = vpack.c.bf16 %v650_v45, %v649_v43  ;;  %v1316_v52 = vpack.c.bf16 %v682_v46, %v681_v44 }
 0x11d   :  { %v1231_v53 = vpack.c.bf16 %v648_v49, %v647_v47  ;;  %v1311_v54 = vpack.c.bf16 %v680_v50, %v679_v48  ;;  %v1457_v55 = vpop.f32.mrb[20].mxu0  ;;  %v1489_v56 = vpop.f32.mrb[20].mxu1 }
 0x11e   :  { %1356 = vst [vmem:[%s1863_s3 + $0x48] sm:$0xff] %v1236_v51   ;;  %1372 = vst [vmem:[%s1863_s3 + $0xc8] sm:$0xff] %v1316_v52   ;;  %v465_v57 = vadd.f32 %v1457_v55, %v1698_v40  ;;  %v593_v58 = vadd.f32 %v1489_v56, %v1698_v40  ;;  %v456_v59 = vpop.f32.mrb[21].mxu0  ;;  %v584_v60 = vpop.f32.mrb[21].mxu1 }
 0x11f   :  { %1355 = vst [vmem:[%s1863_s3 + $0x40] sm:$0xff] %v1231_v53   ;;  %1371 = vst [vmem:[%s1863_s3 + $0xc0] sm:$0xff] %v1311_v54   ;;  %v457_v61 = vadd.f32 %v1698_v40, %v456_v59  ;;  %v585_v62 = vadd.f32 %v1698_v40, %v584_v60  ;;  %v1458_v63 = vpop.f32.mrb[22].mxu0  ;;  %v1490_v0 = vpop.f32.mrb[22].mxu1 }
 0x120   :  { %v468_v1 = vadd.f32 %v1458_v63, %v1698_v40  ;;  %v596_v2 = vadd.f32 %v1490_v0, %v1698_v40  ;;  %v459_v3 = vpop.f32.mrb[23].mxu0  ;;  %v587_v4 = vpop.f32.mrb[23].mxu1  ;;  %v653_v7 = vmax.f32 %v465_v57, 0.0  ;;  %v685_v8 = vmax.f32 %v593_v58, 0.0 }
 0x121   :  { %v460_v5 = vadd.f32 %v1698_v40, %v459_v3  ;;  %v588_v6 = vadd.f32 %v1698_v40, %v587_v4  ;;  %v651_v11 = vmax.f32 %v457_v61, 0.0  ;;  %v683_v12 = vmax.f32 %v585_v62, 0.0 }
 0x122   :  { %v654_v9 = vmax.f32 %v468_v1, 0.0  ;;  %v686_v10 = vmax.f32 %v596_v2, 0.0 }
 0x123   :  { %v652_v13 = vmax.f32 %v460_v5, 0.0  ;;  %v684_v14 = vmax.f32 %v588_v6, 0.0 }
 0x124   :  { %v1246_v15 = vpack.c.bf16 %v654_v9, %v653_v7  ;;  %v1326_v16 = vpack.c.bf16 %v686_v10, %v685_v8 }
 0x125   :  { %v1241_v17 = vpack.c.bf16 %v652_v13, %v651_v11  ;;  %v1321_v18 = vpack.c.bf16 %v684_v14, %v683_v12  ;;  %v1461_v19 = vpop.f32.mrb[24].mxu0  ;;  %v1493_v20 = vpop.f32.mrb[24].mxu1 }
 0x126   :  { %1358 = vst [vmem:[%s1863_s3 + $0x58] sm:$0xff] %v1246_v15   ;;  %1374 = vst [vmem:[%s1863_s3 + $0xd8] sm:$0xff] %v1326_v16   ;;  %v481_v21 = vadd.f32 %v1461_v19, %v1698_v40  ;;  %v609_v22 = vadd.f32 %v1493_v20, %v1698_v40  ;;  %v472_v23 = vpop.f32.mrb[25].mxu0  ;;  %v600_v24 = vpop.f32.mrb[25].mxu1 }
 0x127   :  { %1357 = vst [vmem:[%s1863_s3 + $0x50] sm:$0xff] %v1241_v17   ;;  %1373 = vst [vmem:[%s1863_s3 + $0xd0] sm:$0xff] %v1321_v18   ;;  %v473_v25 = vadd.f32 %v1698_v40, %v472_v23  ;;  %v601_v26 = vadd.f32 %v1698_v40, %v600_v24  ;;  %v1462_v27 = vpop.f32.mrb[26].mxu0  ;;  %v1494_v28 = vpop.f32.mrb[26].mxu1 }
 0x128   :  { %v484_v29 = vadd.f32 %v1462_v27, %v1698_v40  ;;  %v612_v30 = vadd.f32 %v1494_v28, %v1698_v40  ;;  %v475_v31 = vpop.f32.mrb[27].mxu0  ;;  %v603_v32 = vpop.f32.mrb[27].mxu1  ;;  %v657_v35 = vmax.f32 %v481_v21, 0.0  ;;  %v689_v36 = vmax.f32 %v609_v22, 0.0 }
 0x129   :  { %v476_v33 = vadd.f32 %v1698_v40, %v475_v31  ;;  %v604_v34 = vadd.f32 %v1698_v40, %v603_v32  ;;  %v655_v39 = vmax.f32 %v473_v25, 0.0  ;;  %v687_v41 = vmax.f32 %v601_v26, 0.0 }
 0x12a   :  { %v658_v37 = vmax.f32 %v484_v29, 0.0  ;;  %v690_v38 = vmax.f32 %v612_v30, 0.0 }
 0x12b   :  { %v656_v42 = vmax.f32 %v476_v33, 0.0  ;;  %v688_v43 = vmax.f32 %v604_v34, 0.0 }
 0x12c   :  { %v1256_v44 = vpack.c.bf16 %v658_v37, %v657_v35  ;;  %v1336_v45 = vpack.c.bf16 %v690_v38, %v689_v36 }
 0x12d   :  { %v1251_v46 = vpack.c.bf16 %v656_v42, %v655_v39  ;;  %v1331_v47 = vpack.c.bf16 %v688_v43, %v687_v41  ;;  %v1465_v48 = vpop.f32.mrb[28].mxu0  ;;  %v1497_v49 = vpop.f32.mrb[28].mxu1 }
 0x12e   :  { %1360 = vst [vmem:[%s1863_s3 + $0x68] sm:$0xff] %v1256_v44   ;;  %1376 = vst [vmem:[%s1863_s3 + $0xe8] sm:$0xff] %v1336_v45   ;;  %v497_v50 = vadd.f32 %v1465_v48, %v1698_v40  ;;  %v625_v51 = vadd.f32 %v1497_v49, %v1698_v40  ;;  %v488_v52 = vpop.f32.mrb[29].mxu0  ;;  %v616_v53 = vpop.f32.mrb[29].mxu1 }
 0x12f   :  { %1359 = vst [vmem:[%s1863_s3 + $0x60] sm:$0xff] %v1251_v46   ;;  %1375 = vst [vmem:[%s1863_s3 + $0xe0] sm:$0xff] %v1331_v47   ;;  %v489_v54 = vadd.f32 %v1698_v40, %v488_v52  ;;  %v617_v55 = vadd.f32 %v1698_v40, %v616_v53  ;;  %v1466_v56 = vpop.f32.mrb[30].mxu0  ;;  %v1498_v57 = vpop.f32.mrb[30].mxu1 }
 0x130   :  { %v500_v58 = vadd.f32 %v1466_v56, %v1698_v40  ;;  %v628_v59 = vadd.f32 %v1498_v57, %v1698_v40  ;;  %v491_v60 = vpop.f32.mrb[31].mxu0  ;;  %v619_v61 = vpop.f32.mrb[31].mxu1  ;;  %v661_v0 = vmax.f32 %v497_v50, 0.0  ;;  %v693_v1 = vmax.f32 %v625_v51, 0.0 }
 0x131   :  { %v492_v62 = vadd.f32 %v1698_v40, %v491_v60  ;;  %v620_v63 = vadd.f32 %v1698_v40, %v619_v61  ;;  %v659_v4 = vmax.f32 %v489_v54, 0.0  ;;  %v691_v5 = vmax.f32 %v617_v55, 0.0 }
 0x132   :  { %v662_v2 = vmax.f32 %v500_v58, 0.0  ;;  %v694_v3 = vmax.f32 %v628_v59, 0.0 }
 0x133   :  { %v660_v6 = vmax.f32 %v492_v62, 0.0  ;;  %v692_v7 = vmax.f32 %v620_v63, 0.0 }
 0x134   :  { %v1266_v8 = vpack.c.bf16 %v662_v2, %v661_v0  ;;  %v1346_v9 = vpack.c.bf16 %v694_v3, %v693_v1 }
 0x135   :  { %v1261_v10 = vpack.c.bf16 %v660_v6, %v659_v4  ;;  %v1341_v11 = vpack.c.bf16 %v692_v7, %v691_v5 }
 0x136   :  { %1362 = vst [vmem:[%s1863_s3 + $0x78] sm:$0xff] %v1266_v8   ;;  %1378 = vst [vmem:[%s1863_s3 + $0xf8] sm:$0xff] %v1346_v9  }
 0x137   :  { %1361 = vst [vmem:[%s1863_s3 + $0x70] sm:$0xff] %v1261_v10   ;;  %1377 = vst [vmem:[%s1863_s3 + $0xf0] sm:$0xff] %v1341_v11  }

// kernel: bottleneck_forward.7
= control target key start
LH: loop header
LB: loop body
LE: loop exit
PB: predicated region body
PF: predicated region fallthrough
CT: control target
= control target key end

     0   :  { %s636_s1 = inlined_call_operand.vmem [shape: bf16[128,128], index: 1, kind: input, shape index: {}]   ;;  %s637_s0 = inlined_call_operand.vmem [shape: bf16[128,128], index: 0, kind: input, shape index: {}]   ;;  %s638_s3 = inlined_call_operand.vmem [shape: bf16[128,128], index: 3, kind: input, shape index: {}]   ;;  %s639_s2 = inlined_call_operand.vmem [shape: f32[1,128], index: 2, kind: input, shape index: {}]   ;;  %s640_s4 = inlined_call_operand.vmem [shape: f32[128,128], index: 4, kind: output, shape index: {}]  }
   0x1   :  { %v454_v0 = vld [vmem:[%s636_s1] sm:$0xff]   ;;  %v455_v1 = vld [vmem:[%s636_s1 + $0x8] sm:$0xff]   ;;  %v456_v2 = vld [vmem:[%s636_s1 + $0x10] sm:$0xff]  }
   0x2   :  { %406 = vmatprep.subr.bf16.mxu0 %v454_v0  ;;  %438 = vmatprep.subr.bf16.mxu1 %v454_v0  ;;  %v457_v3 = vld [vmem:[%s636_s1 + $0x18] sm:$0xff]   ;;  %v462_v4 = vld [vmem:[%s637_s0] sm:$0xff]   ;;  %v459_v7 = vld [vmem:[%s636_s1 + $0x28] sm:$0xff]  }
   0x3   :  { %407 = vmatpush3.bf16.msra.mxu0 %v454_v0  ;;  %446 = vmatpush3.bf16.msra.mxu1 %v454_v0  ;;  %v463_v5 = vld [vmem:[%s637_s0 + $0x20] sm:$0xff]   ;;  %v460_v8 = vld [vmem:[%s636_s1 + $0x30] sm:$0xff]   ;;  %v461_v9 = vld [vmem:[%s636_s1 + $0x38] sm:$0xff]  }
   0x4   :  { %408 = vmatprep.subr.bf16.mxu0 %v455_v1  ;;  %439 = vmatprep.subr.bf16.mxu1 %v455_v1  ;;  %v458_v6 = vld [vmem:[%s636_s1 + $0x20] sm:$0xff]   ;;  %v464_v10 = vld [vmem:[%s637_s0 + $0x8] sm:$0xff]   ;;  %v466_v12 = vld [vmem:[%s637_s0 + $0x10] sm:$0xff]  }
   0x5   :  { %422 = vmatprep.mubr.bf16.mxu0 %v462_v4  ;;  %430 = vmatprep.mubr.bf16.mxu1 %v463_v5  ;;  %v465_v11 = vld [vmem:[%s637_s0 + $0x28] sm:$0xff]   ;;  %v467_v13 = vld [vmem:[%s637_s0 + $0x30] sm:$0xff]   ;;  %v468_v14 = vld [vmem:[%s637_s0 + $0x18] sm:$0xff]  }
   0x6   :  { %v469_v15 = vld [vmem:[%s637_s0 + $0x38] sm:$0xff]   ;;  %v383_v16 = vld [vmem:[%s638_s3 + $0x8] sm:$0xff]   ;;  %v352_v18 = vld [vmem:[%s638_s3] sm:$0xff]  }
   0x7   :  { %409 = vmatpush3.bf16.msra.mxu0 %v455_v1  ;;  %447 = vmatpush3.bf16.msra.mxu1 %v455_v1  ;;  %v387_v17 = vld [vmem:[%s638_s3 + $0x28] sm:$0xff]   ;;  %v386_v19 = vld [vmem:[%s638_s3 + $0x20] sm:$0xff]   ;;  %v357_v21 = vunpack.c.l.bf16 %v383_v16  ;;  %v353_v25 = vunpack.c.l.bf16 %v352_v18  ;;  %v358_v31 = vunpack.c.h.bf16 %v383_v16  ;;  %v354_v37 = vunpack.c.h.bf16 %v352_v18  ;;  %v385_v49 = vld [vmem:[%s638_s3 + $0x18] sm:$0xff]  }
   0x8   :  { %410 = vmatprep.subr.bf16.mxu0 %v456_v2  ;;  %440 = vmatprep.subr.bf16.mxu1 %v456_v2  ;;  %v558_v20 = vld [vmem:[%s639_s2] ss:$0 sm:$0xff]  ;;  %v373_v22 = vunpack.c.l.bf16 %v387_v17  ;;  %v369_v26 = vunpack.c.l.bf16 %v386_v19  ;;  %v374_v32 = vunpack.c.h.bf16 %v387_v17  ;;  %v370_v38 = vunpack.c.h.bf16 %v386_v19  ;;  %v389_v50 = vld [vmem:[%s638_s3 + $0x38] sm:$0xff]   ;;  %v384_v55 = vld [vmem:[%s638_s3 + $0x10] sm:$0xff]  }
   0x9   :  { %v388_v56 = vld [vmem:[%s638_s3 + $0x30] sm:$0xff]   ;;  %v365_v63 = vunpack.c.l.bf16 %v385_v49  ;;  %v381_v0 = vunpack.c.l.bf16 %v389_v50  ;;  %v361_v5 = vunpack.c.l.bf16 %v384_v55  ;;  %v362_v17 = vunpack.c.h.bf16 %v384_v55 }
   0xa   :  { %v378_v18 = vunpack.c.h.bf16 %v388_v56 }
   0xb   :  { %411 = vmatpush3.bf16.msra.mxu0 %v456_v2  ;;  %448 = vmatpush3.bf16.msra.mxu1 %v456_v2 }
   0xc   :  { %412 = vmatprep.subr.bf16.mxu0 %v457_v3  ;;  %441 = vmatprep.subr.bf16.mxu1 %v457_v3 }
   0xf   :  { %413 = vmatpush3.bf16.msra.mxu0 %v457_v3  ;;  %449 = vmatpush3.bf16.msra.mxu1 %v457_v3 }
  0x10   :  { %414 = vmatprep.subr.bf16.mxu0 %v458_v6  ;;  %442 = vmatprep.subr.bf16.mxu1 %v458_v6 }
  0x13   :  { %415 = vmatpush3.bf16.msra.mxu0 %v458_v6  ;;  %450 = vmatpush3.bf16.msra.mxu1 %v458_v6  ;;  %v377_v6 = vunpack.c.l.bf16 %v388_v56 }
  0x14   :  { %416 = vmatprep.subr.bf16.mxu0 %v459_v7  ;;  %443 = vmatprep.subr.bf16.mxu1 %v459_v7 }
  0x17   :  { %417 = vmatpush3.bf16.msra.mxu0 %v459_v7  ;;  %451 = vmatpush3.bf16.msra.mxu1 %v459_v7 }
  0x18   :  { %418 = vmatprep.subr.bf16.mxu0 %v460_v8  ;;  %444 = vmatprep.subr.bf16.mxu1 %v460_v8 }
  0x1b   :  { %419 = vmatpush3.bf16.msra.mxu0 %v460_v8  ;;  %452 = vmatpush3.bf16.msra.mxu1 %v460_v8 }
  0x1c   :  { %420 = vmatprep.subr.bf16.mxu0 %v461_v9  ;;  %445 = vmatprep.subr.bf16.mxu1 %v461_v9 }
  0x1f   :  { %421 = vmatpush3.bf16.msra.mxu0 %v461_v9  ;;  %453 = vmatpush3.bf16.msra.mxu1 %v461_v9 }
  0x22   :  { %423 = vmatmul.mubr.bf16.vlgmr.msra.gmra.mrb[0].mxu0 %v464_v10  ;;  %431 = vmatmul.mubr.bf16.vlgmr.msra.gmra.mrb[0].mxu1 %v465_v11  ;;  %v366_v11 = vunpack.c.h.bf16 %v385_v49 }
  0x23   :  { %426 = vmatprep.mubr.bf16.mxu0 %v466_v12  ;;  %434 = vmatprep.mubr.bf16.mxu1 %v467_v13  ;;  %v382_v12 = vunpack.c.h.bf16 %v389_v50 }
  0x2a   :  { %427 = vmatmul.mubr.bf16.gmra.mrb[4].mxu0 %v468_v14  ;;  %435 = vmatmul.mubr.bf16.gmra.mrb[4].mxu1 %v469_v15 }
  0xf5   :  { %v424_v23 = vpop.f32.mrb[0].mxu0  ;;  %v432_v24 = vpop.f32.mrb[0].mxu1 }
  0xf6   :  { %v196_v27 = vadd.f32 %v424_v23, %v558_v20  ;;  %v228_v28 = vadd.f32 %v432_v24, %v558_v20  ;;  %v187_v29 = vpop.f32.mrb[1].mxu0  ;;  %v219_v30 = vpop.f32.mrb[1].mxu1 }
  0xf7   :  { %v188_v33 = vadd.f32 %v558_v20, %v187_v29  ;;  %v220_v34 = vadd.f32 %v558_v20, %v219_v30  ;;  %v425_v35 = vpop.f32.mrb[2].mxu0  ;;  %v433_v36 = vpop.f32.mrb[2].mxu1 }
  0xf8   :  { %v284_v39 = vadd.f32 %v357_v21, %v196_v27  ;;  %v292_v40 = vadd.f32 %v373_v22, %v228_v28  ;;  %v199_v41 = vadd.f32 %v425_v35, %v558_v20  ;;  %v231_v42 = vadd.f32 %v433_v36, %v558_v20  ;;  %v190_v43 = vpop.f32.mrb[3].mxu0  ;;  %v222_v44 = vpop.f32.mrb[3].mxu1 }
  0xf9   :  { %v282_v45 = vadd.f32 %v353_v25, %v188_v33  ;;  %v290_v46 = vadd.f32 %v369_v26, %v220_v34  ;;  %v191_v47 = vadd.f32 %v558_v20, %v190_v43  ;;  %v223_v48 = vadd.f32 %v558_v20, %v222_v44 }
  0xfa   :  { %v300_v51 = vmax.f32 %v284_v39, 0.0  ;;  %v308_v52 = vmax.f32 %v292_v40, 0.0  ;;  %v285_v53 = vadd.f32 %v358_v31, %v199_v41  ;;  %v293_v54 = vadd.f32 %v374_v32, %v231_v42 }
  0xfb   :  { %v298_v57 = vmax.f32 %v282_v45, 0.0  ;;  %v306_v58 = vmax.f32 %v290_v46, 0.0  ;;  %v283_v59 = vadd.f32 %v354_v37, %v191_v47  ;;  %v291_v60 = vadd.f32 %v370_v38, %v223_v48 }
  0xfc   :  { %316 = vst [vmem:[%s640_s4 + $0x10] sm:$0xff] %v300_v51  ;;  %324 = vst [vmem:[%s640_s4 + $0x50] sm:$0xff] %v308_v52  ;;  %v301_v61 = vmax.f32 %v285_v53, 0.0  ;;  %v309_v62 = vmax.f32 %v293_v54, 0.0 }
  0xfd   :  { %314 = vst [vmem:[%s640_s4] sm:$0xff] %v298_v57  ;;  %322 = vst [vmem:[%s640_s4 + $0x40] sm:$0xff] %v306_v58  ;;  %v299_v1 = vmax.f32 %v283_v59, 0.0  ;;  %v307_v2 = vmax.f32 %v291_v60, 0.0  ;;  %v428_v3 = vpop.f32.mrb[4].mxu0  ;;  %v436_v4 = vpop.f32.mrb[4].mxu1 }
  0xfe   :  { %317 = vst [vmem:[%s640_s4 + $0x18] sm:$0xff] %v301_v61  ;;  %325 = vst [vmem:[%s640_s4 + $0x58] sm:$0xff] %v309_v62  ;;  %v212_v7 = vadd.f32 %v428_v3, %v558_v20  ;;  %v244_v8 = vadd.f32 %v436_v4, %v558_v20  ;;  %v203_v9 = vpop.f32.mrb[5].mxu0  ;;  %v235_v10 = vpop.f32.mrb[5].mxu1 }
  0xff   :  { %315 = vst [vmem:[%s640_s4 + $0x8] sm:$0xff] %v299_v1  ;;  %323 = vst [vmem:[%s640_s4 + $0x48] sm:$0xff] %v307_v2  ;;  %v204_v13 = vadd.f32 %v558_v20, %v203_v9  ;;  %v236_v14 = vadd.f32 %v558_v20, %v235_v10  ;;  %v429_v15 = vpop.f32.mrb[6].mxu0  ;;  %v437_v16 = vpop.f32.mrb[6].mxu1 }
 0x100   :  { %v288_v19 = vadd.f32 %v365_v63, %v212_v7  ;;  %v296_v21 = vadd.f32 %v381_v0, %v244_v8  ;;  %v215_v22 = vadd.f32 %v429_v15, %v558_v20  ;;  %v247_v23 = vadd.f32 %v437_v16, %v558_v20  ;;  %v206_v24 = vpop.f32.mrb[7].mxu0  ;;  %v238_v25 = vpop.f32.mrb[7].mxu1 }
 0x101   :  { %v286_v26 = vadd.f32 %v361_v5, %v204_v13  ;;  %v294_v27 = vadd.f32 %v377_v6, %v236_v14  ;;  %v207_v28 = vadd.f32 %v558_v20, %v206_v24  ;;  %v239_v29 = vadd.f32 %v558_v20, %v238_v25 }
 0x102   :  { %v304_v30 = vmax.f32 %v288_v19, 0.0  ;;  %v312_v31 = vmax.f32 %v296_v21, 0.0  ;;  %v289_v32 = vadd.f32 %v366_v11, %v215_v22  ;;  %v297_v33 = vadd.f32 %v382_v12, %v247_v23 }
 0x103   :  { %v302_v34 = vmax.f32 %v286_v26, 0.0  ;;  %v310_v35 = vmax.f32 %v294_v27, 0.0  ;;  %v287_v36 = vadd.f32 %v362_v17, %v207_v28  ;;  %v295_v37 = vadd.f32 %v378_v18, %v239_v29 }
 0x104   :  { %320 = vst [vmem:[%s640_s4 + $0x30] sm:$0xff] %v304_v30  ;;  %328 = vst [vmem:[%s640_s4 + $0x70] sm:$0xff] %v312_v31  ;;  %v305_v38 = vmax.f32 %v289_v32, 0.0  ;;  %v313_v39 = vmax.f32 %v297_v33, 0.0 }
 0x105   :  { %318 = vst [vmem:[%s640_s4 + $0x20] sm:$0xff] %v302_v34  ;;  %326 = vst [vmem:[%s640_s4 + $0x60] sm:$0xff] %v310_v35  ;;  %v303_v20 = vmax.f32 %v287_v36, 0.0  ;;  %v311_v40 = vmax.f32 %v295_v37, 0.0 }
 0x106   :  { %321 = vst [vmem:[%s640_s4 + $0x38] sm:$0xff] %v305_v38  ;;  %329 = vst [vmem:[%s640_s4 + $0x78] sm:$0xff] %v313_v39 }
 0x107   :  { %319 = vst [vmem:[%s640_s4 + $0x28] sm:$0xff] %v303_v20  ;;  %327 = vst [vmem:[%s640_s4 + $0x68] sm:$0xff] %v311_v40 }

// kernel: bottleneck_forward.4
= control target key start
LH: loop header
LB: loop body
LE: loop exit
PB: predicated region body
PF: predicated region fallthrough
CT: control target
= control target key end

     0   :  { %s838_s0 = inlined_call_operand.vmem [shape: bf16[16,2,8,256], index: 0, kind: input, shape index: {}]   ;;  %s839_s1 = inlined_call_operand.vmem [shape: bf16[256,128], index: 1, kind: input, shape index: {}]   ;;  %s840_s2 = inlined_call_operand.vmem [shape: f32[1,128], index: 2, kind: input, shape index: {}]   ;;  %s841_s3 = inlined_call_operand.vmem [shape: bf16[16,8,128], index: 3, kind: output, shape index: {}]  }
   0x1   :  { %v637_v0 = vld [vmem:[%s839_s1 + $0x40] sm:$0xff]   ;;  %v639_v2 = vld [vmem:[%s839_s1 + $0x48] sm:$0xff]   ;;  %v641_v4 = vld [vmem:[%s839_s1 + $0x50] sm:$0xff]  }
   0x2   :  { %v638_v1 = vld [vmem:[%s839_s1] sm:$0xff]   ;;  %557 = vmatprep.subr.bf16.mxu0 %v637_v0  ;;  %621 = vmatprep.subr.bf16.mxu1 %v637_v0  ;;  %v640_v3 = vld [vmem:[%s839_s1 + $0x8] sm:$0xff]   ;;  %v642_v5 = vld [vmem:[%s839_s1 + $0x10] sm:$0xff]  }
   0x3   :  { %558 = vmatpush3.bf16.msra.mxu0 %v638_v1  ;;  %629 = vmatpush3.bf16.msra.mxu1 %v638_v1  ;;  %v643_v6 = vld [vmem:[%s839_s1 + $0x58] sm:$0xff]   ;;  %v645_v8 = vld [vmem:[%s839_s1 + $0x60] sm:$0xff]   ;;  %v647_v10 = vld [vmem:[%s839_s1 + $0x68] sm:$0xff]  }
   0x4   :  { %559 = vmatprep.subr.bf16.mxu0 %v639_v2  ;;  %622 = vmatprep.subr.bf16.mxu1 %v639_v2  ;;  %v644_v7 = vld [vmem:[%s839_s1 + $0x18] sm:$0xff]   ;;  %v646_v9 = vld [vmem:[%s839_s1 + $0x20] sm:$0xff]   ;;  %v648_v13 = vld [vmem:[%s839_s1 + $0x28] sm:$0xff]  }
   0x5   :  { %v655_v11 = vld [vmem:[%s838_s0 + $0x4] ss:$16 sps:$4 sm:$0xff]   ;;  %v651_v16 = vld [vmem:[%s839_s1 + $0x78] sm:$0xff]   ;;  %v653_v18 = vld [vmem:[%s838_s0] ss:$16 sps:$4 sm:$0xff]  }
   0x6   :  { %v658_v12 = vld [vmem:[%s838_s0 + $0x84] ss:$16 sps:$4 sm:$0xff]   ;;  %372 = vmatprep.mubr.bf16.mxu0 %v655_v11  ;;  %v652_v17 = vld [vmem:[%s839_s1 + $0x38] sm:$0xff]   ;;  %v656_v19 = vld [vmem:[%s838_s0 + $0x80] ss:$16 sps:$4 sm:$0xff]  }
   0x7   :  { %560 = vmatpush3.bf16.msra.mxu0 %v640_v3  ;;  %630 = vmatpush3.bf16.msra.mxu1 %v640_v3  ;;  %v649_v14 = vld [vmem:[%s839_s1 + $0x70] sm:$0xff]   ;;  %v796_v40 = vld [vmem:[%s840_s2] ss:$0 sm:$0xff] }
   0x8   :  { %561 = vmatprep.subr.bf16.mxu0 %v641_v4  ;;  %623 = vmatprep.subr.bf16.mxu1 %v641_v4  ;;  %v650_v15 = vld [vmem:[%s839_s1 + $0x30] sm:$0xff]  }
   0x9   :  { %404 = vmatprep.mubr.bf16.mxu1 %v658_v12  ;;  %v659_v20 = vld [vmem:[%s838_s0 + $0x24] ss:$16 sps:$4 sm:$0xff]   ;;  %v663_v22 = vld [vmem:[%s838_s0 + $0x20] ss:$16 sps:$4 sm:$0xff]  }
   0xa   :  { %v661_v21 = vld [vmem:[%s838_s0 + $0xa4] ss:$16 sps:$4 sm:$0xff]   ;;  %v664_v23 = vld [vmem:[%s838_s0 + $0xa0] ss:$16 sps:$4 sm:$0xff]  }
   0xb   :  { %562 = vmatpush3.bf16.msra.mxu0 %v642_v5  ;;  %631 = vmatpush3.bf16.msra.mxu1 %v642_v5  ;;  %v665_v24 = vld [vmem:[%s838_s0 + $0x44] ss:$16 sps:$4 sm:$0xff]   ;;  %v669_v26 = vld [vmem:[%s838_s0 + $0x40] ss:$16 sps:$4 sm:$0xff]  }
   0xc   :  { %563 = vmatprep.subr.bf16.mxu0 %v643_v6  ;;  %624 = vmatprep.subr.bf16.mxu1 %v643_v6  ;;  %v667_v25 = vld [vmem:[%s838_s0 + $0xc4] ss:$16 sps:$4 sm:$0xff]   ;;  %v670_v27 = vld [vmem:[%s838_s0 + $0xc0] ss:$16 sps:$4 sm:$0xff]  }
   0xd   :  { %v671_v28 = vld [vmem:[%s838_s0 + $0x64] ss:$16 sps:$4 sm:$0xff]   ;;  %v675_v30 = vld [vmem:[%s838_s0 + $0x60] ss:$16 sps:$4 sm:$0xff]  }
   0xe   :  { %v673_v29 = vld [vmem:[%s838_s0 + $0xe4] ss:$16 sps:$4 sm:$0xff]   ;;  %v676_v31 = vld [vmem:[%s838_s0 + $0xe0] ss:$16 sps:$4 sm:$0xff]  }
   0xf   :  { %564 = vmatpush3.bf16.msra.mxu0 %v644_v7  ;;  %632 = vmatpush3.bf16.msra.mxu1 %v644_v7 }
  0x10   :  { %565 = vmatprep.subr.bf16.mxu0 %v645_v8  ;;  %625 = vmatprep.subr.bf16.mxu1 %v645_v8 }
  0x13   :  { %566 = vmatpush3.bf16.msra.mxu0 %v646_v9  ;;  %633 = vmatpush3.bf16.msra.mxu1 %v646_v9 }
  0x14   :  { %567 = vmatprep.subr.bf16.mxu0 %v647_v10  ;;  %626 = vmatprep.subr.bf16.mxu1 %v647_v10 }
  0x17   :  { %568 = vmatpush3.bf16.msra.mxu0 %v648_v13  ;;  %634 = vmatpush3.bf16.msra.mxu1 %v648_v13 }
  0x18   :  { %569 = vmatprep.subr.bf16.mxu0 %v649_v14  ;;  %627 = vmatprep.subr.bf16.mxu1 %v649_v14 }
  0x1b   :  { %570 = vmatpush3.bf16.msra.mxu0 %v650_v15  ;;  %635 = vmatpush3.bf16.msra.mxu1 %v650_v15 }
  0x1c   :  { %571 = vmatprep.subr.bf16.mxu0 %v651_v16  ;;  %628 = vmatprep.subr.bf16.mxu1 %v651_v16 }
  0x1f   :  { %572 = vmatpush3.bf16.msra.mxu0 %v652_v17  ;;  %636 = vmatpush3.bf16.msra.mxu1 %v652_v17 }
  0x22   :  { %373 = vmatmul.mubr.bf16.vlgmr.msra.gmra.mrb[0].mxu0 %v653_v18  ;;  %405 = vmatmul.mubr.bf16.vlgmr.msra.gmra.mrb[0].mxu1 %v656_v19 }
  0x23   :  { %380 = vmatprep.mubr.bf16.mxu0 %v659_v20  ;;  %412 = vmatprep.mubr.bf16.mxu1 %v661_v21 }
  0x2a   :  { %381 = vmatmul.mubr.bf16.gmra.mrb[4].mxu0 %v663_v22  ;;  %413 = vmatmul.mubr.bf16.gmra.mrb[4].mxu1 %v664_v23 }
  0x2b   :  { %388 = vmatprep.mubr.bf16.mxu0 %v665_v24  ;;  %420 = vmatprep.mubr.bf16.mxu1 %v667_v25 }
  0x32   :  { %389 = vmatmul.mubr.bf16.gmra.mrb[8].mxu0 %v669_v26  ;;  %421 = vmatmul.mubr.bf16.gmra.mrb[8].mxu1 %v670_v27 }
  0x33   :  { %396 = vmatprep.mubr.bf16.mxu0 %v671_v28  ;;  %428 = vmatprep.mubr.bf16.mxu1 %v673_v29 }
  0x3a   :  { %397 = vmatmul.mubr.bf16.gmra.mrb[12].mxu0 %v675_v30  ;;  %429 = vmatmul.mubr.bf16.gmra.mrb[12].mxu1 %v676_v31 }
  0xf5   :  { %v573_v32 = vpop.f32.mrb[0].mxu0  ;;  %v597_v33 = vpop.f32.mrb[0].mxu1 }
  0xf6   :  { %v574_v34 = vpop.f32.mrb[1].mxu0  ;;  %v598_v35 = vpop.f32.mrb[1].mxu1 }
  0xf7   :  { %v575_v36 = vadd.f32 %v574_v34, %v573_v32  ;;  %v599_v37 = vadd.f32 %v598_v35, %v597_v33  ;;  %v576_v38 = vpop.f32.mrb[2].mxu0  ;;  %v600_v39 = vpop.f32.mrb[2].mxu1 }
  0xf8   :  { %v577_v41 = vpop.f32.mrb[3].mxu0  ;;  %v601_v42 = vpop.f32.mrb[3].mxu1 }
  0xf9   :  { %v578_v43 = vadd.f32 %v577_v41, %v576_v38  ;;  %v602_v44 = vadd.f32 %v601_v42, %v600_v39  ;;  %v375_v45 = vadd.f32 %v575_v36, %v796_v40  ;;  %v407_v46 = vadd.f32 %v599_v37, %v796_v40 }
  0xfb   :  { %v378_v47 = vadd.f32 %v578_v43, %v796_v40  ;;  %v410_v48 = vadd.f32 %v602_v44, %v796_v40 }
  0xfd   :  { %v513_v49 = vpack.c.bf16 %v378_v47, %v375_v45  ;;  %v533_v50 = vpack.c.bf16 %v410_v48, %v407_v46  ;;  %v579_v51 = vpop.f32.mrb[4].mxu0  ;;  %v603_v52 = vpop.f32.mrb[4].mxu1 }
  0xfe   :  { %v580_v53 = vpop.f32.mrb[5].mxu0  ;;  %v604_v54 = vpop.f32.mrb[5].mxu1 }
  0xff   :  { %514 = vst [vmem:[%s841_s3] sm:$0xff] %v513_v49   ;;  %553 = vst [vmem:[%s841_s3 + $0x20] sm:$0xff] %v533_v50   ;;  %v581_v55 = vadd.f32 %v580_v53, %v579_v51  ;;  %v605_v56 = vadd.f32 %v604_v54, %v603_v52  ;;  %v582_v57 = vpop.f32.mrb[6].mxu0  ;;  %v606_v58 = vpop.f32.mrb[6].mxu1 }
 0x100   :  { %v583_v59 = vpop.f32.mrb[7].mxu0  ;;  %v607_v60 = vpop.f32.mrb[7].mxu1 }
 0x101   :  { %v584_v61 = vadd.f32 %v583_v59, %v582_v57  ;;  %v608_v62 = vadd.f32 %v607_v60, %v606_v58  ;;  %v383_v63 = vadd.f32 %v581_v55, %v796_v40  ;;  %v415_v0 = vadd.f32 %v605_v56, %v796_v40 }
 0x103   :  { %v386_v1 = vadd.f32 %v584_v61, %v796_v40  ;;  %v418_v2 = vadd.f32 %v608_v62, %v796_v40 }
 0x105   :  { %v518_v3 = vpack.c.bf16 %v386_v1, %v383_v63  ;;  %v538_v4 = vpack.c.bf16 %v418_v2, %v415_v0  ;;  %v585_v5 = vpop.f32.mrb[8].mxu0  ;;  %v609_v6 = vpop.f32.mrb[8].mxu1 }
 0x106   :  { %v586_v7 = vpop.f32.mrb[9].mxu0  ;;  %v610_v8 = vpop.f32.mrb[9].mxu1 }
 0x107   :  { %550 = vst [vmem:[%s841_s3 + $0x8] sm:$0xff] %v518_v3   ;;  %554 = vst [vmem:[%s841_s3 + $0x28] sm:$0xff] %v538_v4   ;;  %v587_v9 = vadd.f32 %v586_v7, %v585_v5  ;;  %v611_v10 = vadd.f32 %v610_v8, %v609_v6  ;;  %v588_v11 = vpop.f32.mrb[10].mxu0  ;;  %v612_v12 = vpop.f32.mrb[10].mxu1 }
 0x108   :  { %v589_v13 = vpop.f32.mrb[11].mxu0  ;;  %v613_v14 = vpop.f32.mrb[11].mxu1 }
 0x109   :  { %v590_v15 = vadd.f32 %v589_v13, %v588_v11  ;;  %v614_v16 = vadd.f32 %v613_v14, %v612_v12  ;;  %v391_v17 = vadd.f32 %v587_v9, %v796_v40  ;;  %v423_v18 = vadd.f32 %v611_v10, %v796_v40 }
 0x10b   :  { %v394_v19 = vadd.f32 %v590_v15, %v796_v40  ;;  %v426_v20 = vadd.f32 %v614_v16, %v796_v40 }
 0x10d   :  { %v523_v21 = vpack.c.bf16 %v394_v19, %v391_v17  ;;  %v543_v22 = vpack.c.bf16 %v426_v20, %v423_v18  ;;  %v591_v23 = vpop.f32.mrb[12].mxu0  ;;  %v615_v24 = vpop.f32.mrb[12].mxu1 }
 0x10e   :  { %v592_v25 = vpop.f32.mrb[13].mxu0  ;;  %v616_v26 = vpop.f32.mrb[13].mxu1 }
 0x10f   :  { %551 = vst [vmem:[%s841_s3 + $0x10] sm:$0xff] %v523_v21   ;;  %555 = vst [vmem:[%s841_s3 + $0x30] sm:$0xff] %v543_v22   ;;  %v593_v27 = vadd.f32 %v592_v25, %v591_v23  ;;  %v617_v28 = vadd.f32 %v616_v26, %v615_v24  ;;  %v594_v29 = vpop.f32.mrb[14].mxu0  ;;  %v618_v30 = vpop.f32.mrb[14].mxu1 }
 0x110   :  { %v595_v31 = vpop.f32.mrb[15].mxu0  ;;  %v619_v32 = vpop.f32.mrb[15].mxu1 }
 0x111   :  { %v596_v33 = vadd.f32 %v595_v31, %v594_v29  ;;  %v620_v34 = vadd.f32 %v619_v32, %v618_v30  ;;  %v399_v35 = vadd.f32 %v593_v27, %v796_v40  ;;  %v431_v36 = vadd.f32 %v617_v28, %v796_v40 }
 0x113   :  { %v402_v37 = vadd.f32 %v596_v33, %v796_v40  ;;  %v434_v38 = vadd.f32 %v620_v34, %v796_v40 }
 0x115   :  { %v528_v39 = vpack.c.bf16 %v402_v37, %v399_v35  ;;  %v548_v41 = vpack.c.bf16 %v434_v38, %v431_v36 }
 0x117   :  { %552 = vst [vmem:[%s841_s3 + $0x18] sm:$0xff] %v528_v39   ;;  %556 = vst [vmem:[%s841_s3 + $0x38] sm:$0xff] %v548_v41  }

// kernel: bottleneck_forward.6
= control target key start
LH: loop header
LB: loop body
LE: loop exit
PB: predicated region body
PF: predicated region fallthrough
CT: control target
= control target key end

     0   :  { %s3162_s12 = smov 0   ;;  %s3164_s13 = smov 0   ;;  %s3546_s0 = inlined_call_operand.vmem [shape: bf16[2,4,9,9,128], index: 0, kind: input, shape index: {}]   ;;  %s3547_s1 = inlined_call_operand.vmem [shape: bf16[9,128,128], index: 1, kind: input, shape index: {}]   ;;  %s3548_s2 = inlined_call_operand.vmem [shape: f32[1,128], index: 2, kind: input, shape index: {}]   ;;  %s3549_s3 = inlined_call_operand.vmem [shape: bf16[2,64,128], index: 3, kind: output, shape index: {}]  }
   0x1   :  { %s3166_s14 = smov 0  }
   0x2 LB: > { %s25_s15 = sadd.s32 1, %s3136_s13  ;;  %p2238_p0 = scmp.ge.s32.totalorder %s3140_s14, 1  ;;  %s3140_s14 = sphi %s3166_s14, %s13_s14   ;;  %s3136_s13 = sphi %s3164_s13, %s3553_s13   ;;  %s3132_s12 = sphi %s3162_s12, %s3552_s12  }
   0x3   : > { %p27_p1 = scmp.ge.s32.totalorder %s25_s15, 2  ;;  %p151_p2 = scmp.lt.s32.totalorder %s3140_s14, 3 }
   0x5   : > { %s3555_s15 = smov (%p27_p1, %s25_s15), 0  ;;  %p152_p3 = pnand %p2238_p0, %p151_p2 }
   0x6   : > { %v3022_v0 = vld [vmem:[%s3547_s1 + $0x40] sm:$0xff] (!%p152_p3)   ;;  %p179_p4 = scmp.lt.s32.totalorder (!%p152_p3), %s3132_s12, 1  ;;  %v3024_v2 = vld [vmem:[%s3547_s1 + $0x48] sm:$0xff] (!%p152_p3)   ;;  %v3026_v4 = vld [vmem:[%s3547_s1 + $0x50] sm:$0xff] (!%p152_p3)   ;;  %vm541_vm0 = vsmask.f32 (!%p152_p3), 3328 }
   0x7   : > { %155 = sbr.rel (%p152_p3) target bundleno = 392 (0x188), region = 32  ;;  %v3023_v1 = vld [vmem:[%s3547_s1 + $0x100] sm:$0xff] (!%p152_p3)   ;;  %2701 = vmatprep.subr.bf16.mxu1 (!%p152_p3), %v3022_v0  ;;  %v3025_v3 = vld [vmem:[%s3547_s1 + $0x108] sm:$0xff] (!%p152_p3)   ;;  %v3027_v5 = vld [vmem:[%s3547_s1 + $0x110] sm:$0xff] (!%p152_p3)   ;;  %vm542_vm1 = vsmask.f32 (!%p152_p3), 7440 }
   0x8   : > { %2797 = vmatprep.subr.bf16.mxu0 (!%p152_p3), %v3023_v1  ;;  %2702 = vmatpush3.bf16.msra.mxu1 (!%p152_p3), %v3022_v0  ;;  %v3028_v6 = vld [vmem:[%s3547_s1 + $0x58] sm:$0xff] (!%p152_p3)   ;;  %v3030_v8 = vld [vmem:[%s3547_s1 + $0x60] sm:$0xff] (!%p152_p3)   ;;  %v3032_v10 = vld [vmem:[%s3547_s1 + $0x68] sm:$0xff] (!%p152_p3)  }
   0x9   : > { %2798 = vmatpush3.bf16.msra.mxu0 (!%p152_p3), %v3023_v1  ;;  %2703 = vmatprep.subr.bf16.mxu1 (!%p152_p3), %v3024_v2  ;;  %v3029_v7 = vld [vmem:[%s3547_s1 + $0x118] sm:$0xff] (!%p152_p3)   ;;  %v3031_v9 = vld [vmem:[%s3547_s1 + $0x120] sm:$0xff] (!%p152_p3)   ;;  %v3033_v12 = vld [vmem:[%s3547_s1 + $0x128] sm:$0xff] (!%p152_p3)  }
   0xa   : > { %2799 = vmatprep.subr.bf16.mxu0 (!%p152_p3), %v3025_v3  ;;  %v3034_v14 = vld [vmem:[%s3547_s1 + $0x70] sm:$0xff] (!%p152_p3)   ;;  %v3036_v16 = vld [vmem:[%s3547_s1 + $0x78] sm:$0xff] (!%p152_p3)   ;;  %v3039_v18 = vld [vmem:[%s3547_s1] sm:$0xff] (!%p152_p3)  }
   0xb   : > { %v3035_v15 = vld [vmem:[%s3547_s1 + $0x130] sm:$0xff] (!%p152_p3)   ;;  %v3037_v17 = vld [vmem:[%s3547_s1 + $0x138] sm:$0xff] (!%p152_p3)   ;;  %v3041_v19 = vld [vmem:[%s3547_s1 + $0x140] sm:$0xff] (!%p152_p3)  }
   0xc   : > { %2704 = vmatpush3.bf16.msra.mxu1 (!%p152_p3), %v3024_v2  ;;  %v3044_v22 = vld [vmem:[%s3547_s1 + $0x8] sm:$0xff] (!%p152_p3)   ;;  %v3046_v26 = vld [vmem:[%s3547_s1 + $0x10] sm:$0xff] (!%p152_p3)   ;;  %v3048_v28 = vld [vmem:[%s3547_s1 + $0x18] sm:$0xff] (!%p152_p3)  }
   0xd   : > { %2800 = vmatpush3.bf16.msra.mxu0 (!%p152_p3), %v3025_v3  ;;  %2705 = vmatprep.subr.bf16.mxu1 (!%p152_p3), %v3026_v4  ;;  %v3045_v23 = vld [vmem:[%s3547_s1 + $0x148] sm:$0xff] (!%p152_p3)   ;;  %v3047_v27 = vld [vmem:[%s3547_s1 + $0x150] sm:$0xff] (!%p152_p3)   ;;  %v3049_v31 = vld [vmem:[%s3547_s1 + $0x158] sm:$0xff] (!%p152_p3)  }
   0xe   : > { %s3557_s12 = smov (!%p179_p4, %s3132_s12), 1  ;;  %2801 = vmatprep.subr.bf16.mxu0 %v3027_v5  ;;  %v3050_v38 = vld [vmem:[%s3547_s1 + $0x20] sm:$0xff]   ;;  %v3052_v47 = vld [vmem:[%s3547_s1 + $0x28] sm:$0xff]   ;;  %vm3287_vm2 = vmor %vm541_vm0, %vm542_vm1 }
   0xf   : > { %s2997_s5 = smul.u32 288, %s3557_s12  ;;  %v3051_v43 = vld [vmem:[%s3547_s1 + $0x160] sm:$0xff]   ;;  %v3053_v50 = vld [vmem:[%s3547_s1 + $0x168] sm:$0xff]   ;;  %v3055_v2 = vld [vmem:[%s3547_s1 + $0x30] sm:$0xff]  }
  0x10   : > { %2706 = vmatpush3.bf16.msra.mxu1 %v3026_v4 }
  0x11   : > { %2802 = vmatpush3.bf16.msra.mxu0 %v3027_v5  ;;  %2707 = vmatprep.subr.bf16.mxu1 %v3028_v6  ;;  %s3216_s16 = scalar_lea.vmem %s3546_s0, %s2997_s5  ;;  %s2561_s5 = sshll.u32 %s3557_s12, 5 }
  0x12   : > { %2803 = vmatprep.subr.bf16.mxu0 %v3029_v7  ;;  %v3038_v11 = vld [vmem:[%s3216_s16 + $0x48] ss:$8 sps:$4 sm:$0xff]   ;;  %v3040_v13 = vld [vmem:[%s3216_s16 + $0xd8] ss:$8 sps:$4 sm:$0xff]   ;;  %v2391_v34 = vld [vmem:[%s3216_s16 + $0x94] sm:$0x1]  ;;  %s192_s8 = scalar_lea.vmem %s3549_s3, %s2561_s5 }
  0x13   : > { %2717 = vmatprep.mubr.bf16.mxu1 %v3038_v11  ;;  %2813 = vmatprep.mubr.bf16.mxu0 %v3040_v13  ;;  %v3042_v20 = vld [vmem:[%s3216_s16 + $0x58] ss:$8 sps:$4 sm:$0xff]   ;;  %v3043_v21 = vld [vmem:[%s3216_s16 + $0xe8] ss:$8 sps:$4 sm:$0xff]   ;;  %v2393_v39 = vld [vmem:[%s3216_s16 + $0x9c] sm:$0x1] }
  0x14   : > { %2708 = vmatpush3.bf16.msra.mxu1 %v3028_v6  ;;  %v3054_v24 = vld [vmem:[%s3216_s16 + $0x68] ss:$8 sps:$4 sm:$0xff]   ;;  %v3056_v25 = vld [vmem:[%s3216_s16 + $0xf8] ss:$8 sps:$4 sm:$0xff]   ;;  %v1182_v40 = vshll.u32 %v2391_v34, 16  ;;  %v1196_v46 = vshll.u32 %v2393_v39, 16 }
  0x15   : > { %2804 = vmatpush3.bf16.msra.mxu0 %v3029_v7  ;;  %2709 = vmatprep.subr.bf16.mxu1 %v3030_v8  ;;  %v3058_v29 = vld [vmem:[%s3216_s16 + $0x78] ss:$8 sps:$4 sm:$0xff]   ;;  %v3059_v30 = vld [vmem:[%s3216_s16 + $0x108] ss:$8 sps:$4 sm:$0xff]   ;;  %v2395_v57 = vld [vmem:[%s3216_s16 + $0xa4] sm:$0x1] }
  0x16   : > { %2805 = vmatprep.subr.bf16.mxu0 %v3031_v9  ;;  %v3062_v32 = vld [vmem:[%s3216_s16] ss:$8 sps:$4 sm:$0xff]   ;;  %v2390_v33 = vld [vmem:[%s3216_s16 + $0x90] sm:$0xf]  ;;  %v2392_v35 = vld [vmem:[%s3216_s16 + $0x98] sm:$0xf] }
  0x17   : > { %v1173_v36 = vshrl.u32 %v2390_v33, 16  ;;  %v1176_v37 = vshll.u32 %v2390_v33, 16  ;;  %v1187_v41 = vshrl.u32 %v2392_v35, 16  ;;  %v1190_v42 = vshll.u32 %v2392_v35, 16  ;;  %v2394_v56 = vld [vmem:[%s3216_s16 + $0xa0] sm:$0xf] }
  0x18   : > { %2710 = vmatpush3.bf16.msra.mxu1 %v3030_v8  ;;  %v1184_v52 = vrot.slane %v1182_v40, 5  ;;  %v1198_v55 = vrot.slane %v1196_v46, 5  ;;  %v2396_v59 = vld [vmem:[%s3216_s16 + $0xa8] sm:$0xf]  ;;  %v2397_v60 = vld [vmem:[%s3216_s16 + $0xac] sm:$0x1] }
  0x19   : > { %2806 = vmatpush3.bf16.msra.mxu0 %v3031_v9  ;;  %2711 = vmatprep.subr.bf16.mxu1 %v3032_v10  ;;  %v1175_v44 = vrot.slane %v1173_v36, 4  ;;  %v1178_v45 = vrot.slane %v1176_v37, 5  ;;  %v1189_v48 = vrot.slane %v1187_v41, 4  ;;  %v1192_v49 = vrot.slane %v1190_v42, 5  ;;  %v3057_v6 = vld [vmem:[%s3547_s1 + $0x170] sm:$0xff]  }
  0x1a   : > { %2807 = vmatprep.subr.bf16.mxu0 %v3033_v12  ;;  %v1201_v61 = vshrl.u32 %v2394_v56, 16  ;;  %v1204_v63 = vshll.u32 %v2394_v56, 16  ;;  %v1210_v0 = vshll.u32 %v2395_v57, 16  ;;  %v1215_v1 = vshrl.u32 %v2396_v59, 16  ;;  %v3076_v37 = vld [vmem:[%s3216_s16 + $0x20] ss:$8 sps:$4 sm:$0xff]  }
  0x1b   : > { %v1179_v51 = vor.u32 %v1178_v45, %v1175_v44  ;;  %v1193_v54 = vor.u32 %v1192_v49, %v1189_v48  ;;  %v1218_v5 = vshll.u32 %v2396_v59, 16  ;;  %v3079_v48 = vld [vmem:[%s3216_s16 + $0x30] ss:$8 sps:$4 sm:$0xff]   ;;  %v2402_v49 = vld [vmem:[%s3216_s16 + $0xc0] sm:$0xf] }
  0x1c   : > { %2712 = vmatpush3.bf16.msra.mxu1 %v3032_v10  ;;  %v1203_v4 = vrot.slane %v1201_v61, 4  ;;  %v1206_v8 = vrot.slane %v1204_v63, 5  ;;  %v1217_v9 = vrot.slane %v1215_v1, 4  ;;  %v1224_v10 = vshll.u32 %v2397_v60, 16  ;;  %v3070_v59 = vld [vmem:[%s3547_s1 + $0x98] sm:$0xff]  }
  0x1d   : > { %2808 = vmatpush3.bf16.msra.mxu0 %v3033_v12  ;;  %2713 = vmatprep.subr.bf16.mxu1 %v3034_v14  ;;  %v1180_v58 = vrot.slane %v1179_v51, 4  ;;  %v1194_v62 = vrot.slane %v1193_v54, 4  ;;  %v1212_v12 = vrot.slane %v1210_v0, 5  ;;  %v1220_v13 = vrot.slane %v1218_v5, 5  ;;  %v2404_v51 = vld [vmem:[%s3216_s16 + $0xc8] sm:$0xf] }
  0x1e   : > { %2809 = vmatprep.subr.bf16.mxu0 %v3035_v15  ;;  %v1257_v56 = vshrl.u32 %v2402_v49, 16  ;;  %v1260_v57 = vshll.u32 %v2402_v49, 16  ;;  %v1271_v61 = vshrl.u32 %v2404_v51, 16 }
  0x1f   : > { %v1185_v3 = vsel %vm3287_vm2, %v1180_v58, %v1184_v52  ;;  %v1199_v7 = vsel %vm3287_vm2, %v1194_v62, %v1198_v55  ;;  %v3069_v52 = vld [vmem:[%s3547_s1 + $0x190] sm:$0xff]   ;;  %v2405_v55 = vld [vmem:[%s3216_s16 + $0xcc] sm:$0x1]  ;;  %v1274_v62 = vshll.u32 %v2404_v51, 16 }
  0x20   : > { %2714 = vmatpush3.bf16.msra.mxu1 %v3034_v14  ;;  %v2422_v11 = vcombine.low %v1185_v3, %v1199_v7  ;;  %v3060_v14 = vld [vmem:[%s3547_s1 + $0x38] sm:$0xff]   ;;  %v1280_v63 = vshll.u32 %v2405_v55, 16  ;;  %v1259_v1 = vrot.slane %v1257_v56, 4 }
  0x21   : > { %2810 = vmatpush3.bf16.msra.mxu0 %v3035_v15  ;;  %2715 = vmatprep.subr.bf16.mxu1 %v3036_v16  ;;  %v1207_v15 = vor.u32 %v1206_v8, %v1203_v4  ;;  %v3071_v4 = vld [vmem:[%s3547_s1 + $0x198] sm:$0xff]   ;;  %v1276_v7 = vrot.slane %v1274_v62, 5 }
  0x22   : > { %2811 = vmatprep.subr.bf16.mxu0 %v3037_v17  ;;  %v1282_v8 = vrot.slane %v1280_v63, 5 }
  0x24   : > { %2716 = vmatpush3.bf16.msra.mxu1 %v3036_v16  ;;  %v1221_v16 = vor.u32 %v1220_v13, %v1217_v9  ;;  %v3072_v13 = vld [vmem:[%s3547_s1 + $0xa0] sm:$0xff]  }
  0x25   : > { %2812 = vmatpush3.bf16.msra.mxu0 %v3037_v17  ;;  %2725 = vmatprep.subr.bf16.mxu1 %v3039_v18  ;;  %v1208_v17 = vrot.slane %v1207_v15, 4 }
  0x26   : > { %2821 = vmatprep.subr.bf16.mxu0 %v3041_v19 }
  0x27   : > { %2718 = vmatmul.mubr.bf16.vlgmr.msra.gmra.mrb[0].mxu1 %v3042_v20  ;;  %v1222_v20 = vrot.slane %v1221_v16, 4  ;;  %v527_v16 = vld [vmem:[%s3216_s16 + $0x8] sm:$0xf] }
  0x28   : > { %2726 = vmatpush3.bf16.msra.mxu1 %v3039_v18  ;;  %2814 = vmatmul.mubr.bf16.vlgmr.msra.gmra.mrb[0].mxu0 %v3043_v21  ;;  %v1226_v18 = vrot.slane %v1224_v10, 5  ;;  %v3063_v21 = vld [vmem:[%s3547_s1 + $0x80] sm:$0xff]  }
  0x29   : > { %2822 = vmatpush3.bf16.msra.mxu0 %v3041_v19  ;;  %2727 = vmatprep.subr.bf16.mxu1 %v3044_v22  ;;  %v3061_v19 = vld [vmem:[%s3547_s1 + $0x178] sm:$0xff]  }
  0x2a   : > { %2823 = vmatprep.subr.bf16.mxu0 %v3045_v23  ;;  %2721 = vmatprep.mubr.bf16.mxu1 %v3054_v24  ;;  %v3064_v24 = vld [vmem:[%s3547_s1 + $0x180] sm:$0xff]  }
  0x2b   : > { %2817 = vmatprep.mubr.bf16.mxu0 %v3056_v25  ;;  %v3065_v25 = vld [vmem:[%s3216_s16 + $0x10] ss:$8 sps:$4 sm:$0xff]  }
  0x2c   : > { %2728 = vmatpush3.bf16.msra.mxu1 %v3044_v22  ;;  %v1213_v22 = vsel %vm3287_vm2, %v1208_v17, %v1212_v12  ;;  %v526_v12 = vld [vmem:[%s3216_s16 + $0x4] sm:$0x1]  ;;  %v528_v17 = vld [vmem:[%s3216_s16 + $0xc] sm:$0x1] }
  0x2d   : > { %2824 = vmatpush3.bf16.msra.mxu0 %v3045_v23  ;;  %2729 = vmatprep.subr.bf16.mxu1 %v3046_v26  ;;  %v1227_v23 = vsel %vm3287_vm2, %v1222_v20, %v1226_v18 }
  0x2e   : > { %2825 = vmatprep.subr.bf16.mxu0 %v3047_v27 }
  0x2f   : > { %2722 = vmatmul.mubr.bf16.gmra.mrb[4].mxu1 %v3058_v29  ;;  %v3067_v29 = vld [vmem:[%s3547_s1 + $0x188] sm:$0xff]  }
  0x30   : > { %2730 = vmatpush3.bf16.msra.mxu1 %v3046_v26  ;;  %2818 = vmatmul.mubr.bf16.gmra.mrb[4].mxu0 %v3059_v30  ;;  %v3066_v26 = vld [vmem:[%s3547_s1 + $0x88] sm:$0xff]   ;;  %v2399_v30 = vld [vmem:[%s3216_s16 + $0xb4] sm:$0x1] }
  0x31   : > { %2826 = vmatpush3.bf16.msra.mxu0 %v3047_v27  ;;  %2731 = vmatprep.subr.bf16.mxu1 %v3048_v28  ;;  %v2398_v27 = vld [vmem:[%s3216_s16 + $0xb0] sm:$0xf]  ;;  %v1238_v35 = vshll.u32 %v2399_v30, 16 }
  0x32   : > { %2827 = vmatprep.subr.bf16.mxu0 %v3049_v31  ;;  %2741 = vmatprep.mubr.bf16.mxu1 %v3062_v32  ;;  %v2401_v32 = vld [vmem:[%s3216_s16 + $0xbc] sm:$0x1]  ;;  %v1229_v33 = vshrl.u32 %v2398_v27, 16  ;;  %v1232_v34 = vshll.u32 %v2398_v27, 16  ;;  %v568_v27 = vshll.u32 %v528_v17, 16 }
  0x33   : > { %2837 = vmatprep.mubr.bf16.mxu0 %v2422_v11  ;;  %v1252_v39 = vshll.u32 %v2401_v32, 16  ;;  %v1240_v44 = vrot.slane %v1238_v35, 5  ;;  %v525_v11 = vld [vmem:[%s3216_s16] sm:$0xf]  ;;  %v3074_v32 = vld [vmem:[%s3547_s1 + $0xa8] sm:$0xff]  }
  0x34   : > { %2732 = vmatpush3.bf16.msra.mxu1 %v3048_v28  ;;  %v2423_v28 = vcombine.low %v1213_v22, %v1227_v23  ;;  %v1231_v40 = vrot.slane %v1229_v33, 4  ;;  %v1234_v41 = vrot.slane %v1232_v34, 5  ;;  %v545_v18 = vshrl.u32 %v525_v11, 16  ;;  %v536_v17 = vld [vmem:[%s3216_s16 + $0x2c] sm:$0x1] }
  0x35   : > { %2828 = vmatpush3.bf16.msra.mxu0 %v3049_v31  ;;  %2733 = vmatprep.subr.bf16.mxu1 %v3050_v38  ;;  %v2400_v31 = vld [vmem:[%s3216_s16 + $0xb8] sm:$0xf]  ;;  %v1254_v46 = vrot.slane %v1252_v39, 5  ;;  %v559_v22 = vshrl.u32 %v527_v16, 16  ;;  %v562_v23 = vshll.u32 %v527_v16, 16 }
  0x36   : > { %2829 = vmatprep.subr.bf16.mxu0 %v3051_v43  ;;  %v1243_v36 = vshrl.u32 %v2400_v31, 16  ;;  %v535_v16 = vld [vmem:[%s3216_s16 + $0x28] sm:$0xf] }
  0x37   : > { %v561_v30 = vrot.slane %v559_v22, 4  ;;  %v615_v22 = vshrl.u32 %v535_v16, 16 }
  0x38   : > { %2734 = vmatpush3.bf16.msra.mxu1 %v3050_v38  ;;  %v1246_v38 = vshll.u32 %v2400_v31, 16  ;;  %v1245_v42 = vrot.slane %v1243_v36, 4  ;;  %v564_v31 = vrot.slane %v562_v23, 5  ;;  %v570_v36 = vrot.slane %v568_v27, 5 }
  0x39   : > { %2830 = vmatpush3.bf16.msra.mxu0 %v3051_v43  ;;  %2735 = vmatprep.subr.bf16.mxu1 %v3052_v47  ;;  %v3068_v43 = vld [vmem:[%s3547_s1 + $0x90] sm:$0xff]   ;;  %v618_v23 = vshll.u32 %v535_v16, 16  ;;  %v2507_v16 = vld [vmem:[%s3216_s16 + $0xc] sm:$0x1] }
  0x3a   : > { %2831 = vmatprep.subr.bf16.mxu0 %v3053_v50  ;;  %v1248_v45 = vrot.slane %v1246_v38, 5  ;;  %v3075_v38 = vld [vmem:[%s3547_s1 + $0x1a8] sm:$0xff]  }
  0x3c   : > { %2736 = vmatpush3.bf16.msra.mxu1 %v3052_v47  ;;  %v1235_v47 = vor.u32 %v1234_v41, %v1231_v40  ;;  %v1249_v54 = vor.u32 %v1248_v45, %v1245_v42  ;;  %v565_v40 = vor.u32 %v564_v31, %v561_v30  ;;  %v529_v41 = vld [vmem:[%s3216_s16 + $0x10] sm:$0xf]  ;;  %v620_v31 = vrot.slane %v618_v23, 5 }
  0x3d   : > { %2832 = vmatpush3.bf16.msra.mxu0 %v3053_v50  ;;  %2737 = vmatprep.subr.bf16.mxu1 %v3055_v2  ;;  %v2403_v50 = vld [vmem:[%s3216_s16 + $0xc4] sm:$0x1]  ;;  %v573_v45 = vshrl.u32 %v529_v41, 16  ;;  %v537_v30 = vld [vmem:[%s3216_s16 + $0x30] sm:$0xf] }
  0x3e   : > { %2833 = vmatprep.subr.bf16.mxu0 %v3057_v6  ;;  %v1266_v58 = vshll.u32 %v2403_v50, 16  ;;  %v1236_v60 = vrot.slane %v1235_v47, 4  ;;  %v1250_v0 = vrot.slane %v1249_v54, 4  ;;  %v532_v47 = vld [vmem:[%s3216_s16 + $0x1c] sm:$0x1] }
  0x40   : > { %2738 = vmatpush3.bf16.msra.mxu1 %v3055_v2  ;;  %v1262_v2 = vrot.slane %v1260_v57, 5  ;;  %v1268_v3 = vrot.slane %v1266_v58, 5  ;;  %v1241_v5 = vsel %vm3287_vm2, %v1236_v60, %v1240_v44  ;;  %v1255_v9 = vsel %vm3287_vm2, %v1250_v0, %v1254_v46  ;;  %v531_v44 = vld [vmem:[%s3216_s16 + $0x18] sm:$0xf]  ;;  %v3078_v60 = vld [vmem:[%s3547_s1 + $0x1b0] sm:$0xff]  }
  0x41   : > { %2834 = vmatpush3.bf16.msra.mxu0 %v3057_v6  ;;  %2739 = vmatprep.subr.bf16.mxu1 %v3060_v14  ;;  %v1273_v6 = vrot.slane %v1271_v61, 4  ;;  %v566_v46 = vrot.slane %v565_v40, 4  ;;  %v587_v50 = vshrl.u32 %v531_v44, 16  ;;  %v590_v54 = vshll.u32 %v531_v44, 16 }
  0x42   : > { %2835 = vmatprep.subr.bf16.mxu0 %v3061_v19  ;;  %v1263_v10 = vor.u32 %v1262_v2, %v1259_v1  ;;  %v596_v58 = vshll.u32 %v532_v47, 16 }
  0x43   : > { %v1277_v15 = vor.u32 %v1276_v7, %v1273_v6  ;;  %v571_v55 = vsel %vm3287_vm2, %v566_v46, %v570_v36  ;;  %v589_v57 = vrot.slane %v587_v50, 4  ;;  %v592_v63 = vrot.slane %v590_v54, 5  ;;  %v3081_v6 = vld [vmem:[%s3547_s1 + $0x1b8] sm:$0xff]   ;;  %v3082_v7 = vld [vmem:[%s3547_s1 + $0xc0] sm:$0xff]  }
  0x44   : > { %2740 = vmatpush3.bf16.msra.mxu1 %v3060_v14  ;;  %v2424_v14 = vcombine.low %v1241_v5, %v1255_v9  ;;  %v1264_v20 = vrot.slane %v1263_v10, 4  ;;  %v3084_v10 = vld [vmem:[%s3547_s1 + $0x1c0] sm:$0xff]   ;;  %v3090_v50 = vld [vmem:[%s3547_s1 + $0xd8] sm:$0xff]  }
  0x45   : > { %2836 = vmatpush3.bf16.msra.mxu0 %v3061_v19  ;;  %2749 = vmatprep.subr.bf16.mxu1 %v3063_v21  ;;  %v548_v19 = vshll.u32 %v525_v11, 16  ;;  %v593_v1 = vor.u32 %v592_v63, %v589_v57  ;;  %v3085_v11 = vld [vmem:[%s3216_s16 + $0x18] ss:$8 sps:$4 sm:$0xff]  }
  0x46   : > { %2845 = vmatprep.subr.bf16.mxu0 %v3064_v24 }
  0x47   : > { %2742 = vmatmul.mubr.bf16.vlgmr.msra.gmra.mrb[0].mxu1 %v3065_v25  ;;  %v547_v25 = vrot.slane %v545_v18, 4  ;;  %v594_v5 = vrot.slane %v593_v1, 4  ;;  %v3087_v18 = vld [vmem:[%s3547_s1 + $0x1c8] sm:$0xff]   ;;  %v3092_v1 = vld [vmem:[%s3547_s1 + $0xe0] sm:$0xff]  }
  0x48   : > { %2750 = vmatpush3.bf16.msra.mxu1 %v3063_v21  ;;  %2838 = vmatmul.mubr.bf16.vlgmr.msra.gmra.mrb[0].mxu0 %v2423_v28  ;;  %v554_v21 = vshll.u32 %v526_v12, 16  ;;  %v3073_v28 = vld [vmem:[%s3547_s1 + $0x1a0] sm:$0xff]  }
  0x49   : > { %2846 = vmatpush3.bf16.msra.mxu0 %v3064_v24  ;;  %2751 = vmatprep.subr.bf16.mxu1 %v3066_v26  ;;  %v1278_v24 = vrot.slane %v1277_v15, 4  ;;  %v533_v12 = vld [vmem:[%s3216_s16 + $0x20] sm:$0xf]  ;;  %v534_v15 = vld [vmem:[%s3216_s16 + $0x24] sm:$0x1] }
  0x4a   : > { %2847 = vmatprep.subr.bf16.mxu0 %v3067_v29  ;;  %2745 = vmatprep.mubr.bf16.mxu1 %v3076_v37  ;;  %v556_v35 = vrot.slane %v554_v21, 5  ;;  %v3083_v37 = vld [vmem:[%s3216_s16 + $0x8] ss:$8 sps:$4 sm:$0xff]   ;;  %v610_v21 = vshll.u32 %v534_v15, 16 }
  0x4b   : > { %2841 = vmatprep.mubr.bf16.mxu0 %v2424_v14  ;;  %v1283_v33 = vsel %vm3287_vm2, %v1278_v24, %v1282_v8  ;;  %v3086_v14 = vld [vmem:[%s3547_s1 + $0xc8] sm:$0xff]   ;;  %v624_v24 = vshll.u32 %v536_v17, 16  ;;  %v2508_v17 = vld [vmem:[%s3216_s16 + $0x10] sm:$0xf] }
  0x4c   : > { %2752 = vmatpush3.bf16.msra.mxu1 %v3066_v26  ;;  %v550_v26 = vrot.slane %v548_v19, 5  ;;  %v601_v19 = vshrl.u32 %v533_v12, 16  ;;  %v2506_v15 = vld [vmem:[%s3216_s16 + $0x8] sm:$0xf]  ;;  %v1819_v23 = vshll.u32 %v2508_v17, 16 }
  0x4d   : > { %2848 = vmatpush3.bf16.msra.mxu0 %v3067_v29  ;;  %2753 = vmatprep.subr.bf16.mxu1 %v3068_v43  ;;  %v1269_v29 = vsel %vm3287_vm2, %v1264_v20, %v1268_v3  ;;  %v598_v3 = vrot.slane %v596_v58, 5  ;;  %v604_v20 = vshll.u32 %v533_v12, 16  ;;  %v3098_v58 = vld [vmem:[%s3216_s16 + $0x38] ss:$8 sps:$4 sm:$0xff]  }
  0x4e   : > { %2849 = vmatprep.subr.bf16.mxu0 %v3069_v52  ;;  %v551_v34 = vor.u32 %v550_v26, %v547_v25  ;;  %v2425_v39 = vcombine.low %v1269_v29, %v1283_v33  ;;  %v3096_v25 = vld [vmem:[%s3216_s16 + $0x28] ss:$8 sps:$4 sm:$0xff]   ;;  %v603_v26 = vrot.slane %v601_v19, 4  ;;  %v617_v29 = vrot.slane %v615_v22, 4  ;;  %v538_v33 = vld [vmem:[%s3216_s16 + $0x34] sm:$0x1] }
  0x4f   : > { %2746 = vmatmul.mubr.bf16.gmra.mrb[4].mxu1 %v3079_v48  ;;  %v576_v48 = vshll.u32 %v529_v41, 16  ;;  %v599_v9 = vsel %vm3287_vm2, %v594_v5, %v598_v3  ;;  %v606_v27 = vrot.slane %v604_v20, 5  ;;  %v638_v40 = vshll.u32 %v538_v33, 16  ;;  %v3089_v41 = vld [vmem:[%s3547_s1 + $0x1d0] sm:$0xff]   ;;  %v3093_v5 = vld [vmem:[%s3547_s1 + $0x1e0] sm:$0xff]   ;;  %v3100_v12 = vld [vmem:[%s3547_s1 + $0xf8] sm:$0xff]  }
  0x50   : > { %2754 = vmatpush3.bf16.msra.mxu1 %v3068_v43  ;;  %v552_v42 = vrot.slane %v551_v34, 4  ;;  %v530_v43 = vld [vmem:[%s3216_s16 + $0x14] sm:$0x1]  ;;  %2842 = vmatmul.mubr.bf16.gmra.mrb[4].mxu0 %v2425_v39  ;;  %v539_v34 = vld [vmem:[%s3216_s16 + $0x38] sm:$0xf]  ;;  %v632_v39 = vshll.u32 %v537_v30, 16 }
  0x51   : > { %2850 = vmatpush3.bf16.msra.mxu0 %v3069_v52  ;;  %2755 = vmatprep.subr.bf16.mxu1 %v3070_v59  ;;  %v582_v49 = vshll.u32 %v530_v43, 16  ;;  %v575_v52 = vrot.slane %v573_v45, 4  ;;  %v578_v56 = vrot.slane %v576_v48, 5  ;;  %v607_v36 = vor.u32 %v606_v27, %v603_v26  ;;  %v2517_v33 = vld [vmem:[%s3216_s16 + $0x34] sm:$0x1] }
  0x52   : > { %2851 = vmatprep.subr.bf16.mxu0 %v3071_v4  ;;  %v557_v51 = vsel %vm3287_vm2, %v552_v42, %v556_v35  ;;  %2861 = vmatprep.mubr.bf16.mxu0 %v3083_v37  ;;  %v3088_v35 = vld [vmem:[%s3547_s1 + $0xd0] sm:$0xff]   ;;  %v540_v37 = vld [vmem:[%s3216_s16 + $0x3c] sm:$0x1]  ;;  %v621_v42 = vor.u32 %v620_v31, %v617_v29  ;;  %v643_v43 = vshrl.u32 %v539_v34, 16  ;;  %v646_v44 = vshll.u32 %v539_v34, 16 }
  0x53   : > { %v2306_v61 = vcombine.low %v557_v51, %v571_v55  ;;  %v584_v62 = vrot.slane %v582_v49, 5  ;;  %v579_v0 = vor.u32 %v578_v56, %v575_v52  ;;  %v652_v45 = vshll.u32 %v540_v37, 16  ;;  %v2516_v29 = vld [vmem:[%s3216_s16 + $0x30] sm:$0xf]  ;;  %v3105_v34 = vld [vmem:[%s3216_s16 + $0x60] ss:$8 sps:$4 sm:$0xff]  }
  0x54   : > { %2756 = vmatpush3.bf16.msra.mxu1 %v3070_v59  ;;  %v3077_v59 = vld [vmem:[%s3547_s1 + $0xb0] sm:$0xff]   ;;  %v608_v46 = vrot.slane %v607_v36, 4  ;;  %v634_v48 = vrot.slane %v632_v39, 5  ;;  %v640_v49 = vrot.slane %v638_v40, 5  ;;  %v622_v51 = vrot.slane %v621_v42, 4  ;;  %v3107_v39 = vld [vmem:[%s3547_s1 + $0x208] sm:$0xff]  }
  0x55   : > { %2852 = vmatpush3.bf16.msra.mxu0 %v3071_v4  ;;  %2757 = vmatprep.subr.bf16.mxu1 %v3072_v13  ;;  %v580_v2 = vrot.slane %v579_v0, 4  ;;  %v3080_v4 = vld [vmem:[%s3547_s1 + $0xb8] sm:$0xff]   ;;  %v645_v52 = vrot.slane %v643_v43, 4  ;;  %v648_v54 = vrot.slane %v646_v44, 5  ;;  %v654_v55 = vrot.slane %v652_v45, 5 }
  0x56   : > { %2853 = vmatprep.subr.bf16.mxu0 %v3073_v28  ;;  %2765 = vmatprep.mubr.bf16.mxu1 %v2306_v61  ;;  %v3091_v61 = vld [vmem:[%s3547_s1 + $0x1d8] sm:$0xff]   ;;  %v1802_v19 = vshrl.u32 %v2506_v15, 16  ;;  %v1805_v20 = vshll.u32 %v2506_v15, 16  ;;  %v1816_v22 = vshrl.u32 %v2508_v17, 16  ;;  %v1875_v42 = vshll.u32 %v2516_v29, 16  ;;  %v3114_v15 = vld [vmem:[%s3547_s1 + $0x220] sm:$0xff]  }
  0x57   : > { %v585_v8 = vsel %vm3287_vm2, %v580_v2, %v584_v62  ;;  %v1881_v43 = vshll.u32 %v2517_v33, 16  ;;  %v3108_v44 = vld [vmem:[%s3216_s16 + $0xb0] ss:$8 sps:$4 sm:$0xff]  }
  0x58   : > { %2758 = vmatpush3.bf16.msra.mxu1 %v3072_v13  ;;  %v2307_v13 = vcombine.low %v585_v8, %v599_v9  ;;  %v3094_v8 = vld [vmem:[%s3547_s1 + $0xe8] sm:$0xff]   ;;  %v1804_v26 = vrot.slane %v1802_v19, 4  ;;  %v1807_v27 = vrot.slane %v1805_v20, 5  ;;  %v1818_v31 = vrot.slane %v1816_v22, 4 }
  0x59   : > { %2854 = vmatpush3.bf16.msra.mxu0 %v3073_v28  ;;  %2759 = vmatprep.subr.bf16.mxu1 %v3074_v32  ;;  %v612_v28 = vrot.slane %v610_v21, 5  ;;  %v3095_v9 = vld [vmem:[%s3547_s1 + $0x1e8] sm:$0xff]   ;;  %v1811_v21 = vshll.u32 %v2507_v16, 16 }
  0x5a   : > { %2855 = vmatprep.subr.bf16.mxu0 %v3075_v38  ;;  %v3115_v20 = vld [vmem:[%s3547_s1 + $0x228] sm:$0xff]  }
  0x5b   : > { %v613_v56 = vsel %vm3287_vm2, %v608_v46, %v612_v28  ;;  %v2515_v28 = vld [vmem:[%s3216_s16 + $0x2c] sm:$0x1]  ;;  %v1813_v45 = vrot.slane %v1811_v21, 5  ;;  %v2519_v21 = vld [vmem:[%s3216_s16 + $0x3c] sm:$0x1] }
  0x5c   : > { %2760 = vmatpush3.bf16.msra.mxu1 %v3074_v32  ;;  %v626_v32 = vrot.slane %v624_v24, 5 }
  0x5d   : > { %2856 = vmatpush3.bf16.msra.mxu0 %v3075_v38  ;;  %2761 = vmatprep.subr.bf16.mxu1 %v3077_v59  ;;  %v629_v38 = vshrl.u32 %v537_v30, 16  ;;  %v3104_v30 = vld [vmem:[%s3216_s16 + $0xa0] ss:$8 sps:$4 sm:$0xff]  }
  0x5e   : > { %2857 = vmatprep.subr.bf16.mxu0 %v3078_v60 }
  0x5f   : > { %v631_v47 = vrot.slane %v629_v38, 4  ;;  %v1867_v38 = vshll.u32 %v2515_v28, 16 }
  0x60   : > { %2762 = vmatpush3.bf16.msra.mxu1 %v3077_v59  ;;  %v627_v59 = vsel %vm3287_vm2, %v622_v51, %v626_v32  ;;  %v1821_v32 = vrot.slane %v1819_v23, 5 }
  0x61   : > { %2858 = vmatpush3.bf16.msra.mxu0 %v3078_v60  ;;  %2763 = vmatprep.subr.bf16.mxu1 %v3080_v4  ;;  %v635_v57 = vor.u32 %v634_v48, %v631_v47  ;;  %v649_v60 = vor.u32 %v648_v54, %v645_v52  ;;  %v2308_v62 = vcombine.low %v613_v56, %v627_v59  ;;  %v1877_v54 = vrot.slane %v1875_v42, 5 }
  0x62   : > { %2859 = vmatprep.subr.bf16.mxu0 %v3081_v6  ;;  %v1822_v40 = vor.u32 %v1821_v32, %v1818_v31  ;;  %v1869_v56 = vrot.slane %v1867_v38, 5  ;;  %v1883_v59 = vrot.slane %v1881_v43, 5  ;;  %v2511_v31 = vld [vmem:[%s3216_s16 + $0x1c] sm:$0x1]  ;;  %v2513_v32 = vld [vmem:[%s3216_s16 + $0x24] sm:$0x1] }
  0x63   : > { %v636_v63 = vrot.slane %v635_v57, 4  ;;  %v650_v0 = vrot.slane %v649_v60, 4  ;;  %v3112_v57 = vld [vmem:[%s3547_s1 + $0x210] sm:$0xff]  }
  0x64   : > { %2764 = vmatpush3.bf16.msra.mxu1 %v3080_v4  ;;  %v3103_v4 = vld [vmem:[%s3216_s16 + $0x50] ss:$8 sps:$4 sm:$0xff]   ;;  %v1823_v51 = vrot.slane %v1822_v40, 4 }
  0x65   : > { %2860 = vmatpush3.bf16.msra.mxu0 %v3081_v6  ;;  %2773 = vmatprep.subr.bf16.mxu1 %v3082_v7  ;;  %v641_v2 = vsel %vm3287_vm2, %v636_v63, %v640_v49  ;;  %v655_v3 = vsel %vm3287_vm2, %v650_v0, %v654_v55  ;;  %v3109_v49 = vld [vmem:[%s3216_s16 + $0x70] ss:$8 sps:$4 sm:$0xff]  }
  0x66   : > { %2869 = vmatprep.subr.bf16.mxu0 %v3084_v10  ;;  %v2309_v6 = vcombine.low %v641_v2, %v655_v3  ;;  %v3113_v3 = vld [vmem:[%s3547_s1 + $0x218] sm:$0xff]  }
  0x67   : > { %2766 = vmatmul.mubr.bf16.vlgmr.msra.gmra.mrb[0].mxu1 %v2307_v13  ;;  %v3101_v13 = vld [vmem:[%s3547_s1 + $0x1f8] sm:$0xff]  }
  0x68   : > { %2774 = vmatpush3.bf16.msra.mxu1 %v3082_v7  ;;  %2862 = vmatmul.mubr.bf16.vlgmr.msra.gmra.mrb[0].mxu0 %v3085_v11  ;;  %v3102_v7 = vld [vmem:[%s3216_s16 + $0x90] ss:$8 sps:$4 sm:$0xff]  }
  0x69   : > { %2870 = vmatpush3.bf16.msra.mxu0 %v3084_v10  ;;  %2775 = vmatprep.subr.bf16.mxu1 %v3086_v14  ;;  %v3097_v10 = vld [vmem:[%s3547_s1 + $0xf0] sm:$0xff]  }
  0x6a   : > { %2871 = vmatprep.subr.bf16.mxu0 %v3087_v18  ;;  %2865 = vmatprep.mubr.bf16.mxu0 %v3096_v25  ;;  %v3099_v11 = vld [vmem:[%s3547_s1 + $0x1f0] sm:$0xff]   ;;  %v2514_v25 = vld [vmem:[%s3216_s16 + $0x28] sm:$0xf] }
  0x6b   : > { %2769 = vmatprep.mubr.bf16.mxu1 %v2308_v62  ;;  %v1858_v36 = vshrl.u32 %v2514_v25, 16  ;;  %v1861_v37 = vshll.u32 %v2514_v25, 16 }
  0x6c   : > { %2776 = vmatpush3.bf16.msra.mxu1 %v3086_v14  ;;  %v3106_v14 = vld [vmem:[%s3547_s1 + $0x200] sm:$0xff]  }
  0x6d   : > { %2872 = vmatpush3.bf16.msra.mxu0 %v3087_v18  ;;  %2777 = vmatprep.subr.bf16.mxu1 %v3088_v35  ;;  %v2509_v18 = vld [vmem:[%s3216_s16 + $0x14] sm:$0x1]  ;;  %v1860_v47 = vrot.slane %v1858_v36, 4  ;;  %v1863_v48 = vrot.slane %v1861_v37, 5 }
  0x6e   : > { %2873 = vmatprep.subr.bf16.mxu0 %v3089_v41  ;;  %v1825_v24 = vshll.u32 %v2509_v18, 16  ;;  %v3116_v37 = vld [vmem:[%s3547_s1 + $0x230] sm:$0xff]  }
  0x6f   : > { %2770 = vmatmul.mubr.bf16.gmra.mrb[4].mxu1 %v2309_v6  ;;  %v1864_v55 = vor.u32 %v1863_v48, %v1860_v47  ;;  %v2520_v6 = vld [vmem:[%s3216_s16 + $0x40] sm:$0xf] }
  0x70   : > { %2778 = vmatpush3.bf16.msra.mxu1 %v3088_v35  ;;  %2866 = vmatmul.mubr.bf16.gmra.mrb[4].mxu0 %v3098_v58  ;;  %v1808_v35 = vor.u32 %v1807_v27, %v1804_v26  ;;  %v1827_v46 = vrot.slane %v1825_v24, 5 }
  0x71   : > { %2874 = vmatpush3.bf16.msra.mxu0 %v3089_v41  ;;  %2779 = vmatprep.subr.bf16.mxu1 %v3090_v50  ;;  %v1872_v41 = vshrl.u32 %v2516_v29, 16  ;;  %v1865_v60 = vrot.slane %v1864_v55, 4 }
  0x72   : > { %2875 = vmatprep.subr.bf16.mxu0 %v3091_v61  ;;  %2885 = vmatprep.mubr.bf16.mxu0 %v3103_v4  ;;  %v1828_v63 = vsel %vm3287_vm2, %v1823_v51, %v1827_v46  ;;  %v3117_v46 = vld [vmem:[%s3547_s1 + $0x238] sm:$0xff]  }
  0x73   : > { %2789 = vmatprep.mubr.bf16.mxu1 %v3102_v7  ;;  %v1874_v52 = vrot.slane %v1872_v41, 4  ;;  %v1870_v2 = vsel %vm3287_vm2, %v1865_v60, %v1869_v56  ;;  %v1853_v41 = vshll.u32 %v2513_v32, 16 }
  0x74   : > { %2780 = vmatpush3.bf16.msra.mxu1 %v3090_v50  ;;  %v1809_v50 = vrot.slane %v1808_v35, 4 }
  0x75   : > { %2876 = vmatpush3.bf16.msra.mxu0 %v3091_v61  ;;  %2781 = vmatprep.subr.bf16.mxu1 %v3092_v1  ;;  %v1878_v58 = vor.u32 %v1877_v54, %v1874_v52  ;;  %v3110_v61 = vld [vmem:[%s3216_s16 + $0xc0] ss:$8 sps:$4 sm:$0xff]  }
  0x76   : > { %2877 = vmatprep.subr.bf16.mxu0 %v3093_v5  ;;  %v1814_v62 = vsel %vm3287_vm2, %v1809_v50, %v1813_v45  ;;  %v1855_v50 = vrot.slane %v1853_v41, 5 }
  0x77   : > { %v1879_v0 = vrot.slane %v1878_v58, 4  ;;  %v2538_v7 = vcombine.low %v1814_v62, %v1828_v63 }
  0x78   : > { %2782 = vmatpush3.bf16.msra.mxu1 %v3092_v1  ;;  %v3111_v1 = vld [vmem:[%s3216_s16 + $0x80] ss:$8 sps:$4 sm:$0xff]  }
  0x79   : > { %2878 = vmatpush3.bf16.msra.mxu0 %v3093_v5  ;;  %2783 = vmatprep.subr.bf16.mxu1 %v3094_v8  ;;  %v1884_v4 = vsel %vm3287_vm2, %v1879_v0, %v1883_v59  ;;  %v2518_v5 = vld [vmem:[%s3216_s16 + $0x38] sm:$0xf] }
  0x7a   : > { %2879 = vmatprep.subr.bf16.mxu0 %v3095_v9 }
  0x7c   : > { %2784 = vmatpush3.bf16.msra.mxu1 %v3094_v8  ;;  %v2510_v8 = vld [vmem:[%s3216_s16 + $0x18] sm:$0xf] }
  0x7d   : > { %2880 = vmatpush3.bf16.msra.mxu0 %v3095_v9  ;;  %2785 = vmatprep.subr.bf16.mxu1 %v3097_v10  ;;  %v2512_v9 = vld [vmem:[%s3216_s16 + $0x20] sm:$0xf]  ;;  %v1830_v16 = vshrl.u32 %v2510_v8, 16  ;;  %v1833_v17 = vshll.u32 %v2510_v8, 16 }
  0x7e   : > { %2881 = vmatprep.subr.bf16.mxu0 %v3099_v11  ;;  %v1844_v18 = vshrl.u32 %v2512_v9, 16  ;;  %v1847_v19 = vshll.u32 %v2512_v9, 16  ;;  %v2550_v9 = vld [vmem:[%s3548_s2] ss:$0 sm:$0xff] }
  0x7f   : > { %v1832_v26 = vrot.slane %v1830_v16, 4  ;;  %v1835_v27 = vrot.slane %v1833_v17, 5 }
  0x80   : > { %2786 = vmatpush3.bf16.msra.mxu1 %v3097_v10  ;;  %v2540_v10 = vcombine.low %v1870_v2, %v1884_v4  ;;  %v1846_v28 = vrot.slane %v1844_v18, 4  ;;  %v1849_v29 = vrot.slane %v1847_v19, 5 }
  0x81   : > { %2882 = vmatpush3.bf16.msra.mxu0 %v3099_v11  ;;  %2787 = vmatprep.subr.bf16.mxu1 %v3100_v12  ;;  %v1886_v11 = vshrl.u32 %v2518_v5, 16  ;;  %v1836_v38 = vor.u32 %v1835_v27, %v1832_v26 }
  0x82   : > { %2883 = vmatprep.subr.bf16.mxu0 %v3101_v13  ;;  %v1850_v40 = vor.u32 %v1849_v29, %v1846_v28 }
  0x83   : > { %v1888_v22 = vrot.slane %v1886_v11, 4  ;;  %v1837_v47 = vrot.slane %v1836_v38, 4 }
  0x84   : > { %2788 = vmatpush3.bf16.msra.mxu1 %v3100_v12  ;;  %v1889_v12 = vshll.u32 %v2518_v5, 16 }
  0x85   : > { %2884 = vmatpush3.bf16.msra.mxu0 %v3101_v13  ;;  %2917 = vmatprep.subr.bf16.mxu1 %v3106_v14  ;;  %v1900_v13 = vshrl.u32 %v2520_v6, 16 }
  0x86   : > { %2893 = vmatprep.subr.bf16.mxu0 %v3106_v14  ;;  %v1891_v23 = vrot.slane %v1889_v12, 5 }
  0x87   : > { %2790 = vmatmul.mubr.bf16.vlgmr.msra.gmra.mrb[0].mxu1 %v3104_v30  ;;  %v1902_v24 = vrot.slane %v1900_v13, 4  ;;  %v2521_v30 = vld [vmem:[%s3216_s16 + $0x44] sm:$0x1] }
  0x88   : > { %2886 = vmatmul.mubr.bf16.vlgmr.msra.gmra.mrb[0].mxu0 %v3105_v34  ;;  %2925 = vmatpush3.bf16.msra.mxu1 %v3106_v14  ;;  %v1892_v33 = vor.u32 %v1891_v23, %v1888_v22  ;;  %v1895_v34 = vshll.u32 %v2519_v21, 16  ;;  %v1909_v36 = vshll.u32 %v2521_v30, 16 }
  0x89   : > { %2894 = vmatpush3.bf16.msra.mxu0 %v3106_v14  ;;  %2918 = vmatprep.subr.bf16.mxu1 %v3107_v39  ;;  %v1903_v14 = vshll.u32 %v2520_v6, 16 }
  0x8a   : > { %2895 = vmatprep.subr.bf16.mxu0 %v3107_v39  ;;  %2793 = vmatprep.mubr.bf16.mxu1 %v3108_v44  ;;  %v1893_v42 = vrot.slane %v1892_v33, 4  ;;  %v1897_v43 = vrot.slane %v1895_v34, 5  ;;  %v1911_v45 = vrot.slane %v1909_v36, 5 }
  0x8b   : > { %2889 = vmatprep.mubr.bf16.mxu0 %v3109_v49  ;;  %v1905_v25 = vrot.slane %v1903_v14, 5  ;;  %v1851_v49 = vrot.slane %v1850_v40, 4 }
  0x8c   : > { %2926 = vmatpush3.bf16.msra.mxu1 %v3107_v39  ;;  %v1898_v51 = vsel %vm3287_vm2, %v1893_v42, %v1897_v43 }
  0x8d   : > { %2896 = vmatpush3.bf16.msra.mxu0 %v3107_v39  ;;  %2919 = vmatprep.subr.bf16.mxu1 %v3112_v57  ;;  %v1906_v35 = vor.u32 %v1905_v25, %v1902_v24  ;;  %v1839_v39 = vshll.u32 %v2511_v31, 16  ;;  %v1856_v55 = vsel %vm3287_vm2, %v1851_v49, %v1855_v50 }
  0x8e   : > { %2897 = vmatprep.subr.bf16.mxu0 %v3112_v57 }
  0x8f   : > { %2794 = vmatmul.mubr.bf16.gmra.mrb[4].mxu1 %v3110_v61  ;;  %v1907_v44 = vrot.slane %v1906_v35, 4  ;;  %v1841_v48 = vrot.slane %v1839_v39, 5 }
  0x90   : > { %2890 = vmatmul.mubr.bf16.gmra.mrb[4].mxu0 %v3111_v1  ;;  %2927 = vmatpush3.bf16.msra.mxu1 %v3112_v57 }
  0x91   : > { %2898 = vmatpush3.bf16.msra.mxu0 %v3112_v57  ;;  %2920 = vmatprep.subr.bf16.mxu1 %v3113_v3  ;;  %v1912_v52 = vsel %vm3287_vm2, %v1907_v44, %v1911_v45  ;;  %v1842_v54 = vsel %vm3287_vm2, %v1837_v47, %v1841_v48 }
  0x92   : > { %2899 = vmatprep.subr.bf16.mxu0 %v3113_v3  ;;  %2909 = vmatprep.mubr.bf16.mxu0 %v2538_v7  ;;  %v2541_v56 = vcombine.low %v1898_v51, %v1912_v52  ;;  %v2539_v57 = vcombine.low %v1842_v54, %v1856_v55 }
  0x93   : > { %2913 = vmatprep.mubr.bf16.mxu1 %v2540_v10 }
  0x94   : > { %2928 = vmatpush3.bf16.msra.mxu1 %v3113_v3 }
  0x95   : > { %2900 = vmatpush3.bf16.msra.mxu0 %v3113_v3  ;;  %2921 = vmatprep.subr.bf16.mxu1 %v3114_v15 }
  0x96   : > { %2901 = vmatprep.subr.bf16.mxu0 %v3114_v15 }
  0x98   : > { %2929 = vmatpush3.bf16.msra.mxu1 %v3114_v15 }
  0x99   : > { %2902 = vmatpush3.bf16.msra.mxu0 %v3114_v15  ;;  %2922 = vmatprep.subr.bf16.mxu1 %v3115_v20 }
  0x9a   : > { %2903 = vmatprep.subr.bf16.mxu0 %v3115_v20 }
  0x9c   : > { %2930 = vmatpush3.bf16.msra.mxu1 %v3115_v20 }
  0x9d   : > { %2904 = vmatpush3.bf16.msra.mxu0 %v3115_v20  ;;  %2923 = vmatprep.subr.bf16.mxu1 %v3116_v37 }
  0x9e   : > { %2905 = vmatprep.subr.bf16.mxu0 %v3116_v37 }
  0xa0   : > { %2931 = vmatpush3.bf16.msra.mxu1 %v3116_v37 }
  0xa1   : > { %2906 = vmatpush3.bf16.msra.mxu0 %v3116_v37  ;;  %2924 = vmatprep.subr.bf16.mxu1 %v3117_v46 }
  0xa2   : > { %2907 = vmatprep.subr.bf16.mxu0 %v3117_v46 }
  0xa4   : > { %2932 = vmatpush3.bf16.msra.mxu1 %v3117_v46 }
  0xa5   : > { %2908 = vmatpush3.bf16.msra.mxu0 %v3117_v46 }
  0xa7   : > { %2914 = vmatmul.mubr.bf16.vlgmr.msra.gmra.mrb[8].mxu1 %v2541_v56 }
  0xa8   : > { %2910 = vmatmul.mubr.bf16.vlgmr.msra.gmra.mrb[0].mxu0 %v2539_v57 }
 0x15a   : > { %v2791_v58 = vpop.f32.mrb[0].mxu1 }
 0x15b   : > { %v944_v59 = vpop.f32.mrb[1].mxu1 }
 0x15c   : > { %v2792_v60 = vpop.f32.mrb[2].mxu1 }
 0x15d   : > { %v947_v61 = vpop.f32.mrb[3].mxu1 }
 0x162   : > { %v2795_v62 = vpop.f32.mrb[4].mxu1 }
 0x163   : > { %v2891_v63 = vpop.f32.mrb[4].mxu0  ;;  %v960_v0 = vpop.f32.mrb[5].mxu1 }
 0x164   : > { %v2937_v1 = vadd.f32 %v2891_v63, %v2795_v62  ;;  %v1762_v2 = vpop.f32.mrb[5].mxu0  ;;  %v2796_v3 = vpop.f32.mrb[6].mxu1 }
 0x165   : > { %v2939_v4 = vadd.f32 %v1762_v2, %v960_v0  ;;  %v2892_v53 = vpop.f32.mrb[6].mxu0  ;;  %v963_v5 = vpop.f32.mrb[7].mxu1 }
 0x166   : > { %v2941_v6 = vadd.f32 %v2892_v53, %v2796_v3  ;;  %v1765_v7 = vpop.f32.mrb[7].mxu0 }
 0x167   : > { %v2943_v8 = vadd.f32 %v1765_v7, %v963_v5 }
 0x17a   : > { %v2915_v10 = vpop.f32.mrb[8].mxu1 }
 0x17b   : > { %v2911_v11 = vpop.f32.mrb[0].mxu0  ;;  %v2938_v12 = vadd.f32 %v2937_v1, %v2915_v10  ;;  %v2044_v13 = vpop.f32.mrb[9].mxu1 }
 0x17c   : > { %v2933_v14 = vadd.f32 %v2911_v11, %v2791_v58  ;;  %v2028_v15 = vpop.f32.mrb[1].mxu0  ;;  %v2940_v16 = vadd.f32 %v2939_v4, %v2044_v13  ;;  %v2916_v17 = vpop.f32.mrb[10].mxu1 }
 0x17d   : > { %v2080_v18 = vadd.f32 %v2938_v12, %v2550_v9  ;;  %v2934_v19 = vadd.f32 %v2028_v15, %v944_v59  ;;  %v2912_v20 = vpop.f32.mrb[2].mxu0  ;;  %v2942_v21 = vadd.f32 %v2941_v6, %v2916_v17  ;;  %v2047_v22 = vpop.f32.mrb[11].mxu1 }
 0x17e   : > { %v2076_v23 = vadd.f32 %v2933_v14, %v2550_v9  ;;  %v2078_v24 = vadd.f32 %v2940_v16, %v2550_v9  ;;  %v2935_v25 = vadd.f32 %v2912_v20, %v2792_v60  ;;  %v2031_v26 = vpop.f32.mrb[3].mxu0  ;;  %v2944_v27 = vadd.f32 %v2943_v8, %v2047_v22 }
 0x17f   : > { %v2074_v28 = vadd.f32 %v2934_v19, %v2550_v9  ;;  %v2081_v29 = vadd.f32 %v2942_v21, %v2550_v9  ;;  %v2936_v30 = vadd.f32 %v2031_v26, %v947_v61  ;;  %v2088_v33 = vmax.f32 %v2080_v18, 0.0 }
 0x180   : > { %v2077_v31 = vadd.f32 %v2935_v25, %v2550_v9  ;;  %v2079_v32 = vadd.f32 %v2944_v27, %v2550_v9  ;;  %v2084_v36 = vmax.f32 %v2076_v23, 0.0  ;;  %v2086_v37 = vmax.f32 %v2078_v24, 0.0 }
 0x181   : > { %v2089_v34 = vmax.f32 %v2081_v29, 0.0  ;;  %v2075_v35 = vadd.f32 %v2936_v30, %v2550_v9  ;;  %v2082_v40 = vmax.f32 %v2074_v28, 0.0 }
 0x182   : > { %v2085_v38 = vmax.f32 %v2077_v31, 0.0  ;;  %v2087_v39 = vmax.f32 %v2079_v32, 0.0 }
 0x183   : > { %v2588_v41 = vpack.c.bf16 %v2089_v34, %v2088_v33  ;;  %v2083_v42 = vmax.f32 %v2075_v35, 0.0 }
 0x184   : > { %v2578_v43 = vpack.c.bf16 %v2085_v38, %v2084_v36  ;;  %v2583_v44 = vpack.c.bf16 %v2087_v39, %v2086_v37 }
 0x185   : > { %2592 = vst [vmem:[%s192_s8 + $0x18] sm:$0xff] %v2588_v41   ;;  %v2573_v45 = vpack.c.bf16 %v2083_v42, %v2082_v40 }
 0x186   : > { %2590 = vst [vmem:[%s192_s8 + $0x8] sm:$0xff] %v2578_v43   ;;  %2591 = vst [vmem:[%s192_s8 + $0x10] sm:$0xff] %v2583_v44  }
 0x187   : > { %2574 = vst [vmem:[%s192_s8] sm:$0xff] %v2573_v45  }
 0x188 PF: > { %s13_s14 = sadd.s32 1, %s3140_s14   ;;  %s3552_s12 = smov %s3136_s13 }
 0x189   : > { %p10_p5 = scmp.ge.s32.totalorder %s13_s14, 4   ;;  %s3553_s13 = smov %s3555_s15 }
 0x18b   :  { %12 = sbr.rel (!%p10_p5) target bundleno = 2 (0x2), region = 76 }

</bundles_post_ra>
